<compile_context>
chip_gen: v6e
topology: v6e:2x2x1
jax: 0.10.0
libtpu: 0.0.40
codegen_flags: <defaults>
</compile_context>

<pallas_src>
import math

import jax
import jax.numpy as jnp
from jax import lax
from jax.experimental import pallas as pl
from jax.experimental.pallas import tpu as pltpu


def _make_attention_kernel(hidden_size, num_heads, seq_len, q_tile, scale):
    head_dim = hidden_size // num_heads
    mm_dtype = jnp.bfloat16
    NEG = -1e30                      # python float: never a captured constant
    ragged = (seq_len % q_tile) != 0

    def kernel(x_ref, wq_ref, bq_ref, wkv_ref, bkv_ref, wproj_ref, bproj_ref,
               o_ref, kv_scratch, ctx_scratch, acc_scratch, m_scratch,
               l_scratch):
        qt = pl.program_id(1)
        q_start = pl.multiple_of(qt * q_tile, q_tile)

        x_tile = x_ref[0]                                        # (tq, D) bf16
        if ragged:
            # Zero padded rows of the last (ragged) tile so stale / NaN block
            # padding can never reach K/V (0 * NaN = NaN in the p @ V matmul).
            valid = (jax.lax.broadcasted_iota(jnp.int32, (q_tile, 1), 0)
                     + q_start) < seq_len
            x_tile = jnp.where(valid, x_tile, jnp.zeros_like(x_tile))

        # ---- incremental K/V projection: this step owns rows
        # [qt*tq, (qt+1)*tq).  Rows [0, qt*tq) were written by earlier qt
        # steps of the SAME batch element.  The qt grid axis is sequential
        # ("arbitrary"); it must NOT be made parallel or this cache breaks.
        kv = jnp.dot(x_tile, wkv_ref[...], preferred_element_type=jnp.float32)
        kv = kv + bkv_ref[...]
        kv_scratch[pl.ds(q_start, q_tile), :] = kv.astype(mm_dtype)

        # ---- Q projection (attention scale folded into Q) ----
        q = jnp.dot(x_tile, wq_ref[...], preferred_element_type=jnp.float32)
        q = ((q + bq_ref[...]) * scale).astype(mm_dtype)         # (tq, D)

        # ---- online-softmax state (per head) ----
        m_scratch[...] = jnp.full(m_scratch.shape, NEG, jnp.float32)
        l_scratch[...] = jnp.zeros(l_scratch.shape, jnp.float32)
        acc_scratch[...] = jnp.zeros(acc_scratch.shape, jnp.float32)

        row = jax.lax.broadcasted_iota(jnp.int32, (q_tile, q_tile), 0) + q_start
        col = jax.lax.broadcasted_iota(jnp.int32, (q_tile, q_tile), 1)

        def kv_tile_body(j, carry):
            kv_off = pl.multiple_of(j * q_tile, q_tile)
            causal = row >= (col + kv_off)                       # (tq, tk)
            for h in range(num_heads):
                lo = h * head_dim
                q_h = q[:, lo:lo + head_dim]                     # (tq, hd) bf16
                k_j = kv_scratch[pl.ds(kv_off, q_tile), lo:lo + head_dim]
                v_j = kv_scratch[pl.ds(kv_off, q_tile),
                                 hidden_size + lo:hidden_size + lo + head_dim]
                # scores = q_h @ k_j^T (contract last dims, no transpose op)
                s = jax.lax.dot_general(q_h, k_j, (((1,), (1,)), ((), ())),
                                        preferred_element_type=jnp.float32)
                s = jnp.where(causal, s, NEG)
                m_prev = m_scratch[h]                            # (tq, 1)
                m_new = jnp.maximum(m_prev, jnp.max(s, axis=-1, keepdims=True))
                alpha = jnp.exp(m_prev - m_new)
                p = jnp.exp(s - m_new)                           # (tq, tk) f32
                l_scratch[h] = (alpha * l_scratch[h]
                                + jnp.sum(p, axis=-1, keepdims=True))
                acc_scratch[:, lo:lo + head_dim] = (
                    alpha * acc_scratch[:, lo:lo + head_dim]
                    + jnp.dot(p.astype(mm_dtype), v_j,
                              preferred_element_type=jnp.float32))
                m_scratch[h] = m_new
            return carry

        # Causal range limiting: only KV tiles 0..qt are ever touched.
        lax.fori_loop(0, qt + 1, kv_tile_body, 0)

        # ---- deferred normalization + head merge via static-offset writes ----
        for h in range(num_heads):
            lo = h * head_dim
            inv_l = pl.reciprocal(l_scratch[h], approx=True)  # eval-mode policy
            ctx_scratch[:, lo:lo + head_dim] = (
                acc_scratch[:, lo:lo + head_dim] * inv_l).astype(mm_dtype)

        # ---- output projection (full-width contraction, one MXU matmul) ----
        out = jnp.dot(ctx_scratch[...], wproj_ref[...],
                      preferred_element_type=jnp.float32)
        out = out + bproj_ref[...]
        o_ref[0] = out.astype(o_ref.dtype)

    return kernel


def _vmem_capacity_bytes():
    try:
        info = pltpu.get_tpu_info()
        cap = getattr(info, "vmem_capacity_bytes", None)
        if cap:
            return int(cap)
    except Exception:
        pass
    return 64 << 20   # conservative (v7x-sized) fallback


def _const_spec_kwargs():
    """pipeline_mode=pl.Buffered(1) for never-changing operands, if supported."""
    try:
        pl.BlockSpec((8, 128), lambda *_: (0, 0), pipeline_mode=pl.Buffered(1))
        return dict(pipeline_mode=pl.Buffered(1))
    except Exception:
        return {}


def jadio_attention_forward(x, w_qkv, b_qkv, w_proj, b_proj, *, num_heads,
                            scale_attn_weights=True):
    """Forward of JadioAttention (eval mode) as a fused Pallas TPU kernel.

    Weight convention: w_qkv is (D, 3D) and w_proj is (D, D) such that
    y = x @ w + b (i.e. the transpose of torch.nn.Linear.weight).
    """
    B, S, D = x.shape
    if D % num_heads != 0:
        raise ValueError("hidden_size must be divisible by num_heads")
    head_dim = D // num_heads
    scale = (1.0 / math.sqrt(head_dim)) if scale_attn_weights else 1.0
    out_dtype = x.dtype
    out_bytes = jnp.dtype(out_dtype).itemsize

    vmem_cap = _vmem_capacity_bytes()
    vmem_budget = int(0.75 * vmem_cap)      # headroom for Mosaic internals

    def vmem_estimate(tq, n_tiles):
        kv_rows = n_tiles * tq
        return (2 * tq * D * 2              # x tile (bf16), double-buffered
                + 2 * tq * D * out_bytes    # out tile, double-buffered
                + 4 * D * D * 2             # bf16 weights, single-buffered
                + 4 * D * 4                 # f32 biases
                + kv_rows * 2 * D * 2       # persistent K|V cache (bf16)
                + tq * D * (2 + 4)          # ctx (bf16) + acc (f32) scratch
                + 2 * num_heads * tq * 4    # m / l scratch
                + 4 * tq * tq * 4           # score / exp / mask temporaries
                + 4 * tq * D * 4)           # q / kv / out temporaries

    # Query-tile selection: 128 by default, 256 on big-VMEM parts (v5e/v6e)
    # when the resident set fits, full-sequence tile only for tiny S.
    if S <= 128:
        q_tile = S
    else:
        q_tile = 128
        if (S % 256 == 0 and S > 256 and vmem_cap >= (96 << 20)
                and 2 * vmem_estimate(256, S // 256) + (4 << 20) <= vmem_budget):
            q_tile = 256
    num_q_tiles = pl.cdiv(S, q_tile)

    est = vmem_estimate(q_tile, num_q_tiles)
    vmem_limit = int(min(max(2 * est + (4 << 20), 32 << 20), vmem_budget))

    # bf16 operands for the MXU; biases stay f32 (added to f32 accumulators).
    xb = x.astype(jnp.bfloat16)
    wq = w_qkv[:, :D].astype(jnp.bfloat16)
    wkv = w_qkv[:, D:].astype(jnp.bfloat16)
    wp = w_proj.astype(jnp.bfloat16)
    bq = b_qkv[:D].reshape(1, D).astype(jnp.float32)
    bkv = b_qkv[D:].reshape(1, 2 * D).astype(jnp.float32)
    bp = b_proj.reshape(1, D).astype(jnp.float32)

    kernel = _make_attention_kernel(D, num_heads, S, q_tile, scale)
    const = _const_spec_kwargs()

    grid_spec = pltpu.PrefetchScalarGridSpec(
        num_scalar_prefetch=0,
        grid=(B, num_q_tiles),
        in_specs=[
            pl.BlockSpec((1, q_tile, D), lambda b, qt: (b, qt, 0)),   # x tile
            pl.BlockSpec((D, D), lambda b, qt: (0, 0), **const),      # W_q
            pl.BlockSpec((1, D), lambda b, qt: (0, 0), **const),      # b_q
            pl.BlockSpec((D, 2 * D), lambda b, qt: (0, 0), **const),  # W_kv
            pl.BlockSpec((1, 2 * D), lambda b, qt: (0, 0), **const),  # b_kv
            pl.BlockSpec((D, D), lambda b, qt: (0, 0), **const),      # W_proj
            pl.BlockSpec((1, D), lambda b, qt: (0, 0), **const),      # b_proj
        ],
        out_specs=pl.BlockSpec((1, q_tile, D), lambda b, qt: (b, qt, 0)),
        scratch_shapes=[
            pltpu.VMEM((num_q_tiles * q_tile, 2 * D), jnp.bfloat16),  # K|V cache
            pltpu.VMEM((q_tile, D), jnp.bfloat16),                    # merged ctx
            pltpu.VMEM((q_tile, D), jnp.float32),                     # online acc
            pltpu.VMEM((num_heads, q_tile, 1), jnp.float32),          # running max
            pltpu.VMEM((num_heads, q_tile, 1), jnp.float32),          # running sum
        ],
    )

    cost = pl.CostEstimate(
        flops=int(2 * B * S * D * (4 * D) + 2 * B * S * S * D),
        transcendentals=int(B * num_heads * S * S // 2),
        bytes_accessed=int(B * S * D * 2 + B * S * D * out_bytes
                           + 4 * D * D * 2 + 4 * D * 4),
    )

    return pl.pallas_call(
        kernel,
        out_shape=jax.ShapeDtypeStruct((B, S, D), out_dtype),
        grid_spec=grid_spec,
        compiler_params=pltpu.CompilerParams(
            dimension_semantics=("parallel", "arbitrary"),
            vmem_limit_bytes=vmem_limit,
        ),
        cost_estimate=cost,
    )(xb, wq, bq, wkv, bkv, wp, bp)


def reference_jax(x, w_qkv, b_qkv, w_proj, b_proj, *, num_heads,
                  scale_attn_weights=True):
    """Plain-JAX f32 reference mirroring the PyTorch forward (eval mode)."""
    B, S, D = x.shape
    hd = D // num_heads
    scale = (1.0 / math.sqrt(hd)) if scale_attn_weights else 1.0

    qkv = x @ w_qkv + b_qkv
    q, k, v = jnp.split(qkv, 3, axis=-1)

    def split_heads(t):
        return t.reshape(B, S, num_heads, hd).transpose(0, 2, 1, 3)

    q, k, v = split_heads(q), split_heads(k), split_heads(v)
    scores = jnp.einsum("bhqd,bhkd->bhqk", q, k) * scale
    causal = jnp.tril(jnp.ones((S, S), dtype=bool))[None, None]
    scores = jnp.where(causal, scores, jnp.finfo(scores.dtype).min)
    w = jax.nn.softmax(scores, axis=-1)
    out = jnp.einsum("bhqk,bhkd->bhqd", w, v)
    out = out.transpose(0, 2, 1, 3).reshape(B, S, D)
    return out @ w_proj + b_proj


if __name__ == "__main__":
    configs = [
        (2, 16, 32, 4),      # tiny config (single q tile)
        (2, 256, 128, 4),    # multi-q-tile path (tq = 128, 2 KV tiles)
        (1, 192, 64, 2),     # ragged last q tile (S not a multiple of 128)
    ]
    for (B, S, D, H) in configs:
        key = jax.random.PRNGKey(0)
        kx, kqkv, kbq, kproj, kbp = jax.random.split(key, 5)

        x = jax.random.normal(kx, (B, S, D), dtype=jnp.float32)
        # std=0.02 init like the module; small non-zero biases to exercise bias adds.
        w_qkv = 0.02 * jax.random.normal(kqkv, (D, 3 * D), dtype=jnp.float32)
        b_qkv = 0.02 * jax.random.normal(kbq, (3 * D,), dtype=jnp.float32)
        w_proj = 0.02 * jax.random.normal(kproj, (D, D), dtype=jnp.float32)
        b_proj = 0.02 * jax.random.normal(kbp, (D,), dtype=jnp.float32)

        out = jadio_attention_forward(x, w_qkv, b_qkv, w_proj, b_proj,
                                      num_heads=H)
        out = jax.block_until_ready(out)

        ref = reference_jax(x, w_qkv, b_qkv, w_proj, b_proj, num_heads=H)
        assert out.shape == (B, S, D)
        max_err = float(jnp.max(jnp.abs(out - ref)))
        assert jnp.allclose(out, ref, atol=1e-2, rtol=5e-2), (
            f"mismatch vs reference (B={B},S={S},D={D},H={H}): max_err={max_err}")

    print("KERNEL_OK")
</pallas_src>

<mosaic_0001>
module attributes {stable_mosaic.version = 11 : i64} {
  func.func @kernel(%arg0: i32, %arg1: i32, %arg2: memref<1x16x32xbf16, #tpu.memory_space<vmem>>, %arg3: memref<32x32xbf16, #tpu.memory_space<vmem>>, %arg4: memref<1x32xf32, #tpu.memory_space<vmem>>, %arg5: memref<32x64xbf16, #tpu.memory_space<vmem>>, %arg6: memref<1x64xf32, #tpu.memory_space<vmem>>, %arg7: memref<32x32xbf16, #tpu.memory_space<vmem>>, %arg8: memref<1x32xf32, #tpu.memory_space<vmem>>, %arg9: memref<1x16x32xf32, #tpu.memory_space<vmem>>, %arg10: memref<16x64xbf16, #tpu.memory_space<vmem>>, %arg11: memref<16x32xbf16, #tpu.memory_space<vmem>>, %arg12: memref<16x32xf32, #tpu.memory_space<vmem>>, %arg13: memref<4x16x1xf32, #tpu.memory_space<vmem>>, %arg14: memref<4x16x1xf32, #tpu.memory_space<vmem>>) attributes {dimension_semantics = [#tpu.dimension_semantics<parallel>, #tpu.dimension_semantics<arbitrary>], iteration_bounds = array<i64: 2, 1>, scalar_prefetch = 0 : i64, scratch_operands = 5 : i64, tpu.core_type = #tpu.core_type<tc>, window_params = [{transform_indices = @transform_0, window_bounds = array<i64: 1, 16, 32>}, {pipeline_mode = #tpu.pipeline_mode<synchronous>, transform_indices = @transform_1, window_bounds = array<i64: 32, 32>}, {pipeline_mode = #tpu.pipeline_mode<synchronous>, transform_indices = @transform_2, window_bounds = array<i64: 1, 32>}, {pipeline_mode = #tpu.pipeline_mode<synchronous>, transform_indices = @transform_3, window_bounds = array<i64: 32, 64>}, {pipeline_mode = #tpu.pipeline_mode<synchronous>, transform_indices = @transform_4, window_bounds = array<i64: 1, 64>}, {pipeline_mode = #tpu.pipeline_mode<synchronous>, transform_indices = @transform_5, window_bounds = array<i64: 32, 32>}, {pipeline_mode = #tpu.pipeline_mode<synchronous>, transform_indices = @transform_6, window_bounds = array<i64: 1, 32>}, {transform_indices = @transform_7, window_bounds = array<i64: 1, 16, 32>}]} {
    %c16_i32 = arith.constant 16 : i32
    %0 = arith.muli %arg1, %c16_i32 : i32
    %1 = tpu.assume_multiple %0, 16 : i32
    %c0 = arith.constant 0 : index
    %c0_0 = arith.constant 0 : index
    %c0_1 = arith.constant 0 : index
    %2 = vector.load %arg2[%c0, %c0_0, %c0_1] : memref<1x16x32xbf16, #tpu.memory_space<vmem>>, vector<1x16x32xbf16>
    %3 = vector.shape_cast %2 : vector<1x16x32xbf16> to vector<16x32xbf16>
    %c0_2 = arith.constant 0 : index
    %c0_3 = arith.constant 0 : index
    %4 = vector.load %arg5[%c0_2, %c0_3] : memref<32x64xbf16, #tpu.memory_space<vmem>>, vector<32x64xbf16>
    %cst = arith.constant dense<0.000000e+00> : vector<16x64xf32>
    %5 = tpu.matmul %3, %4, %cst {dimension_numbers = #tpu.dot_dimension_numbers<[1], [0], [0], [1], [0, 0, 1, 1], [], []>} : vector<16x32xbf16>, vector<32x64xbf16>, vector<16x64xf32> -> vector<16x64xf32>
    %c0_4 = arith.constant 0 : index
    %c0_5 = arith.constant 0 : index
    %6 = vector.load %arg6[%c0_4, %c0_5] : memref<1x64xf32, #tpu.memory_space<vmem>>, vector<1x64xf32>
    %7 = vector.broadcast %6 : vector<1x64xf32> to vector<16x64xf32>
    %8 = arith.addf %5, %7 : vector<16x64xf32>
    %9 = arith.truncf %8 : vector<16x64xf32> to vector<16x64xbf16>
    %10 = arith.index_cast %1 : i32 to index
    %c0_6 = arith.constant 0 : index
    %11 = vector.load %arg10[%10, %c0_6] : memref<16x64xbf16, #tpu.memory_space<vmem>>, vector<16x64xbf16>
    tpu.vector_store %arg10[%10, %c0_6], %9 {strides = array<i32>} : memref<16x64xbf16, #tpu.memory_space<vmem>>, vector<16x64xbf16>,
    %c0_7 = arith.constant 0 : index
    %c0_8 = arith.constant 0 : index
    %12 = vector.load %arg3[%c0_7, %c0_8] : memref<32x32xbf16, #tpu.memory_space<vmem>>, vector<32x32xbf16>
    %cst_9 = arith.constant dense<0.000000e+00> : vector<16x32xf32>
    %13 = tpu.matmul %3, %12, %cst_9 {dimension_numbers = #tpu.dot_dimension_numbers<[1], [0], [0], [1], [0, 0, 1, 1], [], []>} : vector<16x32xbf16>, vector<32x32xbf16>, vector<16x32xf32> -> vector<16x32xf32>
    %c0_10 = arith.constant 0 : index
    %c0_11 = arith.constant 0 : index
    %14 = vector.load %arg4[%c0_10, %c0_11] : memref<1x32xf32, #tpu.memory_space<vmem>>, vector<1x32xf32>
    %15 = vector.broadcast %14 : vector<1x32xf32> to vector<16x32xf32>
    %16 = arith.addf %13, %15 : vector<16x32xf32>
    %cst_12 = arith.constant 0.353553385 : f32
    %17 = vector.broadcast %cst_12 : f32 to vector<16x32xf32>
    %18 = arith.mulf %16, %17 : vector<16x32xf32>
    %19 = arith.truncf %18 : vector<16x32xf32> to vector<16x32xbf16>
    %cst_13 = arith.constant -1.000000e+30 : f32
    %20 = vector.broadcast %cst_13 : f32 to vector<4x16x1xf32>
    %c0_14 = arith.constant 0 : index
    %c0_15 = arith.constant 0 : index
    %c0_16 = arith.constant 0 : index
    %21 = vector.load %arg13[%c0_14, %c0_15, %c0_16] : memref<4x16x1xf32, #tpu.memory_space<vmem>>, vector<4x16x1xf32>
    tpu.vector_store %arg13[%c0_14, %c0_15, %c0_16], %20 {strides = array<i32>} : memref<4x16x1xf32, #tpu.memory_space<vmem>>, vector<4x16x1xf32>,
    %cst_17 = arith.constant 0.000000e+00 : f32
    %22 = vector.broadcast %cst_17 : f32 to vector<4x16x1xf32>
    %c0_18 = arith.constant 0 : index
    %c0_19 = arith.constant 0 : index
    %c0_20 = arith.constant 0 : index
    %23 = vector.load %arg14[%c0_18, %c0_19, %c0_20] : memref<4x16x1xf32, #tpu.memory_space<vmem>>, vector<4x16x1xf32>
    tpu.vector_store %arg14[%c0_18, %c0_19, %c0_20], %22 {strides = array<i32>} : memref<4x16x1xf32, #tpu.memory_space<vmem>>, vector<4x16x1xf32>,
    %cst_21 = arith.constant 0.000000e+00 : f32
    %24 = vector.broadcast %cst_21 : f32 to vector<16x32xf32>
    %c0_22 = arith.constant 0 : index
    %c0_23 = arith.constant 0 : index
    %25 = vector.load %arg12[%c0_22, %c0_23] : memref<16x32xf32, #tpu.memory_space<vmem>>, vector<16x32xf32>
    tpu.vector_store %arg12[%c0_22, %c0_23], %24 {strides = array<i32>} : memref<16x32xf32, #tpu.memory_space<vmem>>, vector<16x32xf32>,
    %26 = tpu.iota {dimensions = array<i32: 0>} : vector<16x16xi32>
    %27 = vector.broadcast %1 : i32 to vector<16x16xi32>
    %28 = arith.addi %26, %27 : vector<16x16xi32>
    %29 = tpu.iota {dimensions = array<i32: 1>} : vector<16x16xi32>
    %c1_i32 = arith.constant 1 : i32
    %30 = arith.addi %arg1, %c1_i32 : i32
    %c0_i32 = arith.constant 0 : i32
    %c0_i32_24 = arith.constant 0 : i32
    %31 = arith.subi %30, %c0_i32_24 : i32
    %32 = arith.addi %c0_i32_24, %31 : i32
    %c1_i32_25 = arith.constant 1 : i32
    scf.for %arg15 = %c0_i32_24 to %32 step %c1_i32_25  : i32 {
      %c16_i32_58 = arith.constant 16 : i32
      %74 = arith.muli %arg15, %c16_i32_58 : i32
      %75 = tpu.assume_multiple %74, 16 : i32
      %76 = vector.broadcast %75 : i32 to vector<16x16xi32>
      %77 = arith.addi %29, %76 : vector<16x16xi32>
      %78 = arith.cmpi sge, %28, %77 : vector<16x16xi32>
      %79 = vector.extract_strided_slice %19 {offsets = [0, 0], sizes = [16, 8], strides = [1, 1]} : vector<16x32xbf16> to vector<16x8xbf16>
      %80 = arith.index_cast %75 : i32 to index
      %c0_59 = arith.constant 0 : index
      %81 = vector.load %arg10[%80, %c0_59] : memref<16x64xbf16, #tpu.memory_space<vmem>>, vector<16x8xbf16>
      %82 = arith.index_cast %75 : i32 to index
      %c32 = arith.constant 32 : index
      %83 = vector.load %arg10[%82, %c32] : memref<16x64xbf16, #tpu.memory_space<vmem>>, vector<16x8xbf16>
      %cst_60 = arith.constant dense<0.000000e+00> : vector<16x16xf32>
      %84 = tpu.matmul %79, %81, %cst_60 {dimension_numbers = #tpu.dot_dimension_numbers<[1], [1], [0], [0], [0, 0, 1, 0], [], []>} : vector<16x8xbf16>, vector<16x8xbf16>, vector<16x16xf32> -> vector<16x16xf32>
      %cst_61 = arith.constant -1.000000e+30 : f32
      %85 = vector.broadcast %cst_61 : f32 to vector<16x16xf32>
      %86 = arith.select %78, %84, %85 : vector<16x16xi1>, vector<16x16xf32>
      %c0_62 = arith.constant 0 : index
      %c0_63 = arith.constant 0 : index
      %c0_64 = arith.constant 0 : index
      %87 = vector.load %arg13[%c0_62, %c0_63, %c0_64] : memref<4x16x1xf32, #tpu.memory_space<vmem>>, vector<1x16x1xf32>
      %88 = vector.shape_cast %87 : vector<1x16x1xf32> to vector<16x1xf32>
      %cst_65 = arith.constant dense<0xFF800000> : vector<16xf32>
      %89 = vector.multi_reduction <maximumf>, %86, %cst_65 [1] : vector<16x16xf32> to vector<16xf32>
      %90 = vector.shape_cast %89 : vector<16xf32> to vector<16x1xf32>
      %91 = arith.maximumf %88, %90 : vector<16x1xf32>
      %92 = arith.subf %88, %91 : vector<16x1xf32>
      %93 = math.exp %92 : vector<16x1xf32>
      %94 = vector.broadcast %91 : vector<16x1xf32> to vector<16x16xf32>
      %95 = arith.subf %86, %94 : vector<16x16xf32>
      %96 = math.exp %95 : vector<16x16xf32>
      %c0_66 = arith.constant 0 : index
      %c0_67 = arith.constant 0 : index
      %c0_68 = arith.constant 0 : index
      %97 = vector.load %arg14[%c0_66, %c0_67, %c0_68] : memref<4x16x1xf32, #tpu.memory_space<vmem>>, vector<1x16x1xf32>
      %98 = vector.shape_cast %97 : vector<1x16x1xf32> to vector<16x1xf32>
      %99 = arith.mulf %93, %98 : vector<16x1xf32>
      %cst_69 = arith.constant dense<0.000000e+00> : vector<16xf32>
      %100 = vector.multi_reduction <add>, %96, %cst_69 [1] : vector<16x16xf32> to vector<16xf32>
      %101 = vector.shape_cast %100 : vector<16xf32> to vector<16x1xf32>
      %102 = arith.addf %99, %101 : vector<16x1xf32>
      %c0_70 = arith.constant 0 : index
      %c0_71 = arith.constant 0 : index
      %c0_72 = arith.constant 0 : index
      %103 = vector.load %arg14[%c0_70, %c0_71, %c0_72] : memref<4x16x1xf32, #tpu.memory_space<vmem>>, vector<1x16x1xf32>
      %104 = vector.shape_cast %103 : vector<1x16x1xf32> to vector<16x1xf32>
      %105 = vector.shape_cast %102 : vector<16x1xf32> to vector<1x16x1xf32>
      tpu.vector_store %arg14[%c0_70, %c0_71, %c0_72], %105 {strides = array<i32>} : memref<4x16x1xf32, #tpu.memory_space<vmem>>, vector<1x16x1xf32>,
      %c0_73 = arith.constant 0 : index
      %c0_74 = arith.constant 0 : index
      %106 = vector.load %arg12[%c0_73, %c0_74] : memref<16x32xf32, #tpu.memory_space<vmem>>, vector<16x8xf32>
      %107 = vector.broadcast %93 : vector<16x1xf32> to vector<16x8xf32>
      %108 = arith.mulf %107, %106 : vector<16x8xf32>
      %109 = arith.truncf %96 : vector<16x16xf32> to vector<16x16xbf16>
      %cst_75 = arith.constant dense<0.000000e+00> : vector<16x8xf32>
      %110 = tpu.matmul %109, %83, %cst_75 {dimension_numbers = #tpu.dot_dimension_numbers<[1], [0], [0], [1], [0, 0, 1, 1], [], []>} : vector<16x16xbf16>, vector<16x8xbf16>, vector<16x8xf32> -> vector<16x8xf32>
      %111 = arith.addf %108, %110 : vector<16x8xf32>
      %c0_76 = arith.constant 0 : index
      %c0_77 = arith.constant 0 : index
      %112 = vector.load %arg12[%c0_76, %c0_77] : memref<16x32xf32, #tpu.memory_space<vmem>>, vector<16x8xf32>
      tpu.vector_store %arg12[%c0_76, %c0_77], %111 {strides = array<i32>} : memref<16x32xf32, #tpu.memory_space<vmem>>, vector<16x8xf32>,
      %c0_78 = arith.constant 0 : index
      %c0_79 = arith.constant 0 : index
      %c0_80 = arith.constant 0 : index
      %113 = vector.load %arg13[%c0_78, %c0_79, %c0_80] : memref<4x16x1xf32, #tpu.memory_space<vmem>>, vector<1x16x1xf32>
      %114 = vector.shape_cast %113 : vector<1x16x1xf32> to vector<16x1xf32>
      %115 = vector.shape_cast %91 : vector<16x1xf32> to vector<1x16x1xf32>
      tpu.vector_store %arg13[%c0_78, %c0_79, %c0_80], %115 {strides = array<i32>} : memref<4x16x1xf32, #tpu.memory_space<vmem>>, vector<1x16x1xf32>,
      %116 = vector.extract_strided_slice %19 {offsets = [0, 8], sizes = [16, 8], strides = [1, 1]} : vector<16x32xbf16> to vector<16x8xbf16>
      %117 = arith.index_cast %75 : i32 to index
      %c8_81 = arith.constant 8 : index
      %118 = vector.load %arg10[%117, %c8_81] : memref<16x64xbf16, #tpu.memory_space<vmem>>, vector<16x8xbf16>
      %119 = arith.index_cast %75 : i32 to index
      %c40 = arith.constant 40 : index
      %120 = vector.load %arg10[%119, %c40] : memref<16x64xbf16, #tpu.memory_space<vmem>>, vector<16x8xbf16>
      %cst_82 = arith.constant dense<0.000000e+00> : vector<16x16xf32>
      %121 = tpu.matmul %116, %118, %cst_82 {dimension_numbers = #tpu.dot_dimension_numbers<[1], [1], [0], [0], [0, 0, 1, 0], [], []>} : vector<16x8xbf16>, vector<16x8xbf16>, vector<16x16xf32> -> vector<16x16xf32>
      %cst_83 = arith.constant -1.000000e+30 : f32
      %122 = vector.broadcast %cst_83 : f32 to vector<16x16xf32>
      %123 = arith.select %78, %121, %122 : vector<16x16xi1>, vector<16x16xf32>
      %c1_84 = arith.constant 1 : index
      %c0_85 = arith.constant 0 : index
      %c0_86 = arith.constant 0 : index
      %124 = vector.load %arg13[%c1_84, %c0_85, %c0_86] : memref<4x16x1xf32, #tpu.memory_space<vmem>>, vector<1x16x1xf32>
      %125 = vector.shape_cast %124 : vector<1x16x1xf32> to vector<16x1xf32>
      %cst_87 = arith.constant dense<0xFF800000> : vector<16xf32>
      %126 = vector.multi_reduction <maximumf>, %123, %cst_87 [1] : vector<16x16xf32> to vector<16xf32>
      %127 = vector.shape_cast %126 : vector<16xf32> to vector<16x1xf32>
      %128 = arith.maximumf %125, %127 : vector<16x1xf32>
      %129 = arith.subf %125, %128 : vector<16x1xf32>
      %130 = math.exp %129 : vector<16x1xf32>
      %131 = vector.broadcast %128 : vector<16x1xf32> to vector<16x16xf32>
      %132 = arith.subf %123, %131 : vector<16x16xf32>
      %133 = math.exp %132 : vector<16x16xf32>
      %c1_88 = arith.constant 1 : index
      %c0_89 = arith.constant 0 : index
      %c0_90 = arith.constant 0 : index
      %134 = vector.load %arg14[%c1_88, %c0_89, %c0_90] : memref<4x16x1xf32, #tpu.memory_space<vmem>>, vector<1x16x1xf32>
      %135 = vector.shape_cast %134 : vector<1x16x1xf32> to vector<16x1xf32>
      %136 = arith.mulf %130, %135 : vector<16x1xf32>
      %cst_91 = arith.constant dense<0.000000e+00> : vector<16xf32>
      %137 = vector.multi_reduction <add>, %133, %cst_91 [1] : vector<16x16xf32> to vector<16xf32>
      %138 = vector.shape_cast %137 : vector<16xf32> to vector<16x1xf32>
      %139 = arith.addf %136, %138 : vector<16x1xf32>
      %c1_92 = arith.constant 1 : index
      %c0_93 = arith.constant 0 : index
      %c0_94 = arith.constant 0 : index
      %140 = vector.load %arg14[%c1_92, %c0_93, %c0_94] : memref<4x16x1xf32, #tpu.memory_space<vmem>>, vector<1x16x1xf32>
      %141 = vector.shape_cast %140 : vector<1x16x1xf32> to vector<16x1xf32>
      %142 = vector.shape_cast %139 : vector<16x1xf32> to vector<1x16x1xf32>
      tpu.vector_store %arg14[%c1_92, %c0_93, %c0_94], %142 {strides = array<i32>} : memref<4x16x1xf32, #tpu.memory_space<vmem>>, vector<1x16x1xf32>,
      %c0_95 = arith.constant 0 : index
      %c8_96 = arith.constant 8 : index
      %143 = vector.load %arg12[%c0_95, %c8_96] : memref<16x32xf32, #tpu.memory_space<vmem>>, vector<16x8xf32>
      %144 = vector.broadcast %130 : vector<16x1xf32> to vector<16x8xf32>
      %145 = arith.mulf %144, %143 : vector<16x8xf32>
      %146 = arith.truncf %133 : vector<16x16xf32> to vector<16x16xbf16>
      %cst_97 = arith.constant dense<0.000000e+00> : vector<16x8xf32>
      %147 = tpu.matmul %146, %120, %cst_97 {dimension_numbers = #tpu.dot_dimension_numbers<[1], [0], [0], [1], [0, 0, 1, 1], [], []>} : vector<16x16xbf16>, vector<16x8xbf16>, vector<16x8xf32> -> vector<16x8xf32>
      %148 = arith.addf %145, %147 : vector<16x8xf32>
      %c0_98 = arith.constant 0 : index
      %c8_99 = arith.constant 8 : index
      %149 = vector.load %arg12[%c0_98, %c8_99] : memref<16x32xf32, #tpu.memory_space<vmem>>, vector<16x8xf32>
      tpu.vector_store %arg12[%c0_98, %c8_99], %148 {strides = array<i32>} : memref<16x32xf32, #tpu.memory_space<vmem>>, vector<16x8xf32>,
      %c1_100 = arith.constant 1 : index
      %c0_101 = arith.constant 0 : index
      %c0_102 = arith.constant 0 : index
      %150 = vector.load %arg13[%c1_100, %c0_101, %c0_102] : memref<4x16x1xf32, #tpu.memory_space<vmem>>, vector<1x16x1xf32>
      %151 = vector.shape_cast %150 : vector<1x16x1xf32> to vector<16x1xf32>
      %152 = vector.shape_cast %128 : vector<16x1xf32> to vector<1x16x1xf32>
      tpu.vector_store %arg13[%c1_100, %c0_101, %c0_102], %152 {strides = array<i32>} : memref<4x16x1xf32, #tpu.memory_space<vmem>>, vector<1x16x1xf32>,
      %153 = vector.extract_strided_slice %19 {offsets = [0, 16], sizes = [16, 8], strides = [1, 1]} : vector<16x32xbf16> to vector<16x8xbf16>
      %154 = arith.index_cast %75 : i32 to index
      %c16_103 = arith.constant 16 : index
      %155 = vector.load %arg10[%154, %c16_103] : memref<16x64xbf16, #tpu.memory_space<vmem>>, vector<16x8xbf16>
      %156 = arith.index_cast %75 : i32 to index
      %c48 = arith.constant 48 : index
      %157 = vector.load %arg10[%156, %c48] : memref<16x64xbf16, #tpu.memory_space<vmem>>, vector<16x8xbf16>
      %cst_104 = arith.constant dense<0.000000e+00> : vector<16x16xf32>
      %158 = tpu.matmul %153, %155, %cst_104 {dimension_numbers = #tpu.dot_dimension_numbers<[1], [1], [0], [0], [0, 0, 1, 0], [], []>} : vector<16x8xbf16>, vector<16x8xbf16>, vector<16x16xf32> -> vector<16x16xf32>
      %cst_105 = arith.constant -1.000000e+30 : f32
      %159 = vector.broadcast %cst_105 : f32 to vector<16x16xf32>
      %160 = arith.select %78, %158, %159 : vector<16x16xi1>, vector<16x16xf32>
      %c2_106 = arith.constant 2 : index
      %c0_107 = arith.constant 0 : index
      %c0_108 = arith.constant 0 : index
      %161 = vector.load %arg13[%c2_106, %c0_107, %c0_108] : memref<4x16x1xf32, #tpu.memory_space<vmem>>, vector<1x16x1xf32>
      %162 = vector.shape_cast %161 : vector<1x16x1xf32> to vector<16x1xf32>
      %cst_109 = arith.constant dense<0xFF800000> : vector<16xf32>
      %163 = vector.multi_reduction <maximumf>, %160, %cst_109 [1] : vector<16x16xf32> to vector<16xf32>
      %164 = vector.shape_cast %163 : vector<16xf32> to vector<16x1xf32>
      %165 = arith.maximumf %162, %164 : vector<16x1xf32>
      %166 = arith.subf %162, %165 : vector<16x1xf32>
      %167 = math.exp %166 : vector<16x1xf32>
      %168 = vector.broadcast %165 : vector<16x1xf32> to vector<16x16xf32>
      %169 = arith.subf %160, %168 : vector<16x16xf32>
      %170 = math.exp %169 : vector<16x16xf32>
      %c2_110 = arith.constant 2 : index
      %c0_111 = arith.constant 0 : index
      %c0_112 = arith.constant 0 : index
      %171 = vector.load %arg14[%c2_110, %c0_111, %c0_112] : memref<4x16x1xf32, #tpu.memory_space<vmem>>, vector<1x16x1xf32>
      %172 = vector.shape_cast %171 : vector<1x16x1xf32> to vector<16x1xf32>
      %173 = arith.mulf %167, %172 : vector<16x1xf32>
      %cst_113 = arith.constant dense<0.000000e+00> : vector<16xf32>
      %174 = vector.multi_reduction <add>, %170, %cst_113 [1] : vector<16x16xf32> to vector<16xf32>
      %175 = vector.shape_cast %174 : vector<16xf32> to vector<16x1xf32>
      %176 = arith.addf %173, %175 : vector<16x1xf32>
      %c2_114 = arith.constant 2 : index
      %c0_115 = arith.constant 0 : index
      %c0_116 = arith.constant 0 : index
      %177 = vector.load %arg14[%c2_114, %c0_115, %c0_116] : memref<4x16x1xf32, #tpu.memory_space<vmem>>, vector<1x16x1xf32>
      %178 = vector.shape_cast %177 : vector<1x16x1xf32> to vector<16x1xf32>
      %179 = vector.shape_cast %176 : vector<16x1xf32> to vector<1x16x1xf32>
      tpu.vector_store %arg14[%c2_114, %c0_115, %c0_116], %179 {strides = array<i32>} : memref<4x16x1xf32, #tpu.memory_space<vmem>>, vector<1x16x1xf32>,
      %c0_117 = arith.constant 0 : index
      %c16_118 = arith.constant 16 : index
      %180 = vector.load %arg12[%c0_117, %c16_118] : memref<16x32xf32, #tpu.memory_space<vmem>>, vector<16x8xf32>
      %181 = vector.broadcast %167 : vector<16x1xf32> to vector<16x8xf32>
      %182 = arith.mulf %181, %180 : vector<16x8xf32>
      %183 = arith.truncf %170 : vector<16x16xf32> to vector<16x16xbf16>
      %cst_119 = arith.constant dense<0.000000e+00> : vector<16x8xf32>
      %184 = tpu.matmul %183, %157, %cst_119 {dimension_numbers = #tpu.dot_dimension_numbers<[1], [0], [0], [1], [0, 0, 1, 1], [], []>} : vector<16x16xbf16>, vector<16x8xbf16>, vector<16x8xf32> -> vector<16x8xf32>
      %185 = arith.addf %182, %184 : vector<16x8xf32>
      %c0_120 = arith.constant 0 : index
      %c16_121 = arith.constant 16 : index
      %186 = vector.load %arg12[%c0_120, %c16_121] : memref<16x32xf32, #tpu.memory_space<vmem>>, vector<16x8xf32>
      tpu.vector_store %arg12[%c0_120, %c16_121], %185 {strides = array<i32>} : memref<16x32xf32, #tpu.memory_space<vmem>>, vector<16x8xf32>,
      %c2_122 = arith.constant 2 : index
      %c0_123 = arith.constant 0 : index
      %c0_124 = arith.constant 0 : index
      %187 = vector.load %arg13[%c2_122, %c0_123, %c0_124] : memref<4x16x1xf32, #tpu.memory_space<vmem>>, vector<1x16x1xf32>
      %188 = vector.shape_cast %187 : vector<1x16x1xf32> to vector<16x1xf32>
      %189 = vector.shape_cast %165 : vector<16x1xf32> to vector<1x16x1xf32>
      tpu.vector_store %arg13[%c2_122, %c0_123, %c0_124], %189 {strides = array<i32>} : memref<4x16x1xf32, #tpu.memory_space<vmem>>, vector<1x16x1xf32>,
      %190 = vector.extract_strided_slice %19 {offsets = [0, 24], sizes = [16, 8], strides = [1, 1]} : vector<16x32xbf16> to vector<16x8xbf16>
      %191 = arith.index_cast %75 : i32 to index
      %c24_125 = arith.constant 24 : index
      %192 = vector.load %arg10[%191, %c24_125] : memref<16x64xbf16, #tpu.memory_space<vmem>>, vector<16x8xbf16>
      %193 = arith.index_cast %75 : i32 to index
      %c56 = arith.constant 56 : index
      %194 = vector.load %arg10[%193, %c56] : memref<16x64xbf16, #tpu.memory_space<vmem>>, vector<16x8xbf16>
      %cst_126 = arith.constant dense<0.000000e+00> : vector<16x16xf32>
      %195 = tpu.matmul %190, %192, %cst_126 {dimension_numbers = #tpu.dot_dimension_numbers<[1], [1], [0], [0], [0, 0, 1, 0], [], []>} : vector<16x8xbf16>, vector<16x8xbf16>, vector<16x16xf32> -> vector<16x16xf32>
      %cst_127 = arith.constant -1.000000e+30 : f32
      %196 = vector.broadcast %cst_127 : f32 to vector<16x16xf32>
      %197 = arith.select %78, %195, %196 : vector<16x16xi1>, vector<16x16xf32>
      %c3_128 = arith.constant 3 : index
      %c0_129 = arith.constant 0 : index
      %c0_130 = arith.constant 0 : index
      %198 = vector.load %arg13[%c3_128, %c0_129, %c0_130] : memref<4x16x1xf32, #tpu.memory_space<vmem>>, vector<1x16x1xf32>
      %199 = vector.shape_cast %198 : vector<1x16x1xf32> to vector<16x1xf32>
      %cst_131 = arith.constant dense<0xFF800000> : vector<16xf32>
      %200 = vector.multi_reduction <maximumf>, %197, %cst_131 [1] : vector<16x16xf32> to vector<16xf32>
      %201 = vector.shape_cast %200 : vector<16xf32> to vector<16x1xf32>
      %202 = arith.maximumf %199, %201 : vector<16x1xf32>
      %203 = arith.subf %199, %202 : vector<16x1xf32>
      %204 = math.exp %203 : vector<16x1xf32>
      %205 = vector.broadcast %202 : vector<16x1xf32> to vector<16x16xf32>
      %206 = arith.subf %197, %205 : vector<16x16xf32>
      %207 = math.exp %206 : vector<16x16xf32>
      %c3_132 = arith.constant 3 : index
      %c0_133 = arith.constant 0 : index
      %c0_134 = arith.constant 0 : index
      %208 = vector.load %arg14[%c3_132, %c0_133, %c0_134] : memref<4x16x1xf32, #tpu.memory_space<vmem>>, vector<1x16x1xf32>
      %209 = vector.shape_cast %208 : vector<1x16x1xf32> to vector<16x1xf32>
      %210 = arith.mulf %204, %209 : vector<16x1xf32>
      %cst_135 = arith.constant dense<0.000000e+00> : vector<16xf32>
      %211 = vector.multi_reduction <add>, %207, %cst_135 [1] : vector<16x16xf32> to vector<16xf32>
      %212 = vector.shape_cast %211 : vector<16xf32> to vector<16x1xf32>
      %213 = arith.addf %210, %212 : vector<16x1xf32>
      %c3_136 = arith.constant 3 : index
      %c0_137 = arith.constant 0 : index
      %c0_138 = arith.constant 0 : index
      %214 = vector.load %arg14[%c3_136, %c0_137, %c0_138] : memref<4x16x1xf32, #tpu.memory_space<vmem>>, vector<1x16x1xf32>
      %215 = vector.shape_cast %214 : vector<1x16x1xf32> to vector<16x1xf32>
      %216 = vector.shape_cast %213 : vector<16x1xf32> to vector<1x16x1xf32>
      tpu.vector_store %arg14[%c3_136, %c0_137, %c0_138], %216 {strides = array<i32>} : memref<4x16x1xf32, #tpu.memory_space<vmem>>, vector<1x16x1xf32>,
      %c0_139 = arith.constant 0 : index
      %c24_140 = arith.constant 24 : index
      %217 = vector.load %arg12[%c0_139, %c24_140] : memref<16x32xf32, #tpu.memory_space<vmem>>, vector<16x8xf32>
      %218 = vector.broadcast %204 : vector<16x1xf32> to vector<16x8xf32>
      %219 = arith.mulf %218, %217 : vector<16x8xf32>
      %220 = arith.truncf %207 : vector<16x16xf32> to vector<16x16xbf16>
      %cst_141 = arith.constant dense<0.000000e+00> : vector<16x8xf32>
      %221 = tpu.matmul %220, %194, %cst_141 {dimension_numbers = #tpu.dot_dimension_numbers<[1], [0], [0], [1], [0, 0, 1, 1], [], []>} : vector<16x16xbf16>, vector<16x8xbf16>, vector<16x8xf32> -> vector<16x8xf32>
      %222 = arith.addf %219, %221 : vector<16x8xf32>
      %c0_142 = arith.constant 0 : index
      %c24_143 = arith.constant 24 : index
      %223 = vector.load %arg12[%c0_142, %c24_143] : memref<16x32xf32, #tpu.memory_space<vmem>>, vector<16x8xf32>
      tpu.vector_store %arg12[%c0_142, %c24_143], %222 {strides = array<i32>} : memref<16x32xf32, #tpu.memory_space<vmem>>, vector<16x8xf32>,
      %c3_144 = arith.constant 3 : index
      %c0_145 = arith.constant 0 : index
      %c0_146 = arith.constant 0 : index
      %224 = vector.load %arg13[%c3_144, %c0_145, %c0_146] : memref<4x16x1xf32, #tpu.memory_space<vmem>>, vector<1x16x1xf32>
      %225 = vector.shape_cast %224 : vector<1x16x1xf32> to vector<16x1xf32>
      %226 = vector.shape_cast %202 : vector<16x1xf32> to vector<1x16x1xf32>
      tpu.vector_store %arg13[%c3_144, %c0_145, %c0_146], %226 {strides = array<i32>} : memref<4x16x1xf32, #tpu.memory_space<vmem>>, vector<1x16x1xf32>,
    }
    %c0_26 = arith.constant 0 : index
    %c0_27 = arith.constant 0 : index
    %c0_28 = arith.constant 0 : index
    %33 = vector.load %arg14[%c0_26, %c0_27, %c0_28] : memref<4x16x1xf32, #tpu.memory_space<vmem>>, vector<1x16x1xf32>
    %34 = vector.shape_cast %33 : vector<1x16x1xf32> to vector<16x1xf32>
    %35 = tpu.reciprocal %34 {approx = true} : vector<16x1xf32> -> vector<16x1xf32>
    %c0_29 = arith.constant 0 : index
    %c0_30 = arith.constant 0 : index
    %36 = vector.load %arg12[%c0_29, %c0_30] : memref<16x32xf32, #tpu.memory_space<vmem>>, vector<16x8xf32>
    %37 = vector.broadcast %35 : vector<16x1xf32> to vector<16x8xf32>
    %38 = arith.mulf %36, %37 : vector<16x8xf32>
    %39 = arith.truncf %38 : vector<16x8xf32> to vector<16x8xbf16>
    %c0_31 = arith.constant 0 : index
    %c0_32 = arith.constant 0 : index
    %40 = vector.load %arg11[%c0_31, %c0_32] : memref<16x32xbf16, #tpu.memory_space<vmem>>, vector<16x8xbf16>
    tpu.vector_store %arg11[%c0_31, %c0_32], %39 {strides = array<i32>} : memref<16x32xbf16, #tpu.memory_space<vmem>>, vector<16x8xbf16>,
    %c1 = arith.constant 1 : index
    %c0_33 = arith.constant 0 : index
    %c0_34 = arith.constant 0 : index
    %41 = vector.load %arg14[%c1, %c0_33, %c0_34] : memref<4x16x1xf32, #tpu.memory_space<vmem>>, vector<1x16x1xf32>
    %42 = vector.shape_cast %41 : vector<1x16x1xf32> to vector<16x1xf32>
    %43 = tpu.reciprocal %42 {approx = true} : vector<16x1xf32> -> vector<16x1xf32>
    %c0_35 = arith.constant 0 : index
    %c8 = arith.constant 8 : index
    %44 = vector.load %arg12[%c0_35, %c8] : memref<16x32xf32, #tpu.memory_space<vmem>>, vector<16x8xf32>
    %45 = vector.broadcast %43 : vector<16x1xf32> to vector<16x8xf32>
    %46 = arith.mulf %44, %45 : vector<16x8xf32>
    %47 = arith.truncf %46 : vector<16x8xf32> to vector<16x8xbf16>
    %c0_36 = arith.constant 0 : index
    %c8_37 = arith.constant 8 : index
    %48 = vector.load %arg11[%c0_36, %c8_37] : memref<16x32xbf16, #tpu.memory_space<vmem>>, vector<16x8xbf16>
    tpu.vector_store %arg11[%c0_36, %c8_37], %47 {strides = array<i32>} : memref<16x32xbf16, #tpu.memory_space<vmem>>, vector<16x8xbf16>,
    %c2 = arith.constant 2 : index
    %c0_38 = arith.constant 0 : index
    %c0_39 = arith.constant 0 : index
    %49 = vector.load %arg14[%c2, %c0_38, %c0_39] : memref<4x16x1xf32, #tpu.memory_space<vmem>>, vector<1x16x1xf32>
    %50 = vector.shape_cast %49 : vector<1x16x1xf32> to vector<16x1xf32>
    %51 = tpu.reciprocal %50 {approx = true} : vector<16x1xf32> -> vector<16x1xf32>
    %c0_40 = arith.constant 0 : index
    %c16 = arith.constant 16 : index
    %52 = vector.load %arg12[%c0_40, %c16] : memref<16x32xf32, #tpu.memory_space<vmem>>, vector<16x8xf32>
    %53 = vector.broadcast %51 : vector<16x1xf32> to vector<16x8xf32>
    %54 = arith.mulf %52, %53 : vector<16x8xf32>
    %55 = arith.truncf %54 : vector<16x8xf32> to vector<16x8xbf16>
    %c0_41 = arith.constant 0 : index
    %c16_42 = arith.constant 16 : index
    %56 = vector.load %arg11[%c0_41, %c16_42] : memref<16x32xbf16, #tpu.memory_space<vmem>>, vector<16x8xbf16>
    tpu.vector_store %arg11[%c0_41, %c16_42], %55 {strides = array<i32>} : memref<16x32xbf16, #tpu.memory_space<vmem>>, vector<16x8xbf16>,
    %c3 = arith.constant 3 : index
    %c0_43 = arith.constant 0 : index
    %c0_44 = arith.constant 0 : index
    %57 = vector.load %arg14[%c3, %c0_43, %c0_44] : memref<4x16x1xf32, #tpu.memory_space<vmem>>, vector<1x16x1xf32>
    %58 = vector.shape_cast %57 : vector<1x16x1xf32> to vector<16x1xf32>
    %59 = tpu.reciprocal %58 {approx = true} : vector<16x1xf32> -> vector<16x1xf32>
    %c0_45 = arith.constant 0 : index
    %c24 = arith.constant 24 : index
    %60 = vector.load %arg12[%c0_45, %c24] : memref<16x32xf32, #tpu.memory_space<vmem>>, vector<16x8xf32>
    %61 = vector.broadcast %59 : vector<16x1xf32> to vector<16x8xf32>
    %62 = arith.mulf %60, %61 : vector<16x8xf32>
    %63 = arith.truncf %62 : vector<16x8xf32> to vector<16x8xbf16>
    %c0_46 = arith.constant 0 : index
    %c24_47 = arith.constant 24 : index
    %64 = vector.load %arg11[%c0_46, %c24_47] : memref<16x32xbf16, #tpu.memory_space<vmem>>, vector<16x8xbf16>
    tpu.vector_store %arg11[%c0_46, %c24_47], %63 {strides = array<i32>} : memref<16x32xbf16, #tpu.memory_space<vmem>>, vector<16x8xbf16>,
    %c0_48 = arith.constant 0 : index
    %c0_49 = arith.constant 0 : index
    %65 = vector.load %arg11[%c0_48, %c0_49] : memref<16x32xbf16, #tpu.memory_space<vmem>>, vector<16x32xbf16>
    %c0_50 = arith.constant 0 : index
    %c0_51 = arith.constant 0 : index
    %66 = vector.load %arg7[%c0_50, %c0_51] : memref<32x32xbf16, #tpu.memory_space<vmem>>, vector<32x32xbf16>
    %cst_52 = arith.constant dense<0.000000e+00> : vector<16x32xf32>
    %67 = tpu.matmul %65, %66, %cst_52 {dimension_numbers = #tpu.dot_dimension_numbers<[1], [0], [0], [1], [0, 0, 1, 1], [], []>} : vector<16x32xbf16>, vector<32x32xbf16>, vector<16x32xf32> -> vector<16x32xf32>
    %c0_53 = arith.constant 0 : index
    %c0_54 = arith.constant 0 : index
    %68 = vector.load %arg8[%c0_53, %c0_54] : memref<1x32xf32, #tpu.memory_space<vmem>>, vector<1x32xf32>
    %69 = vector.broadcast %68 : vector<1x32xf32> to vector<16x32xf32>
    %70 = arith.addf %67, %69 : vector<16x32xf32>
    %c0_55 = arith.constant 0 : index
    %c0_56 = arith.constant 0 : index
    %c0_57 = arith.constant 0 : index
    %71 = vector.load %arg9[%c0_55, %c0_56, %c0_57] : memref<1x16x32xf32, #tpu.memory_space<vmem>>, vector<1x16x32xf32>
    %72 = vector.shape_cast %71 : vector<1x16x32xf32> to vector<16x32xf32>
    %73 = vector.shape_cast %70 : vector<16x32xf32> to vector<1x16x32xf32>
    tpu.vector_store %arg9[%c0_55, %c0_56, %c0_57], %73 {strides = array<i32>} : memref<1x16x32xf32, #tpu.memory_space<vmem>>, vector<1x16x32xf32>,
    return
  }
  func.func @transform_0(%arg0: i32, %arg1: i32) -> (i32, i32, i32) {
    %c0_i32 = arith.constant 0 : i32
    %c0_i32_0 = arith.constant 0 : i32
    return %arg0, %arg1, %c0_i32 : i32, i32, i32
  }
  func.func @transform_1(%arg0: i32, %arg1: i32) -> (i32, i32) {
    %c0_i32 = arith.constant 0 : i32
    %c0_i32_0 = arith.constant 0 : i32
    %c0_i32_1 = arith.constant 0 : i32
    return %c0_i32, %c0_i32_0 : i32, i32
  }
  func.func @transform_2(%arg0: i32, %arg1: i32) -> (i32, i32) {
    %c0_i32 = arith.constant 0 : i32
    %c0_i32_0 = arith.constant 0 : i32
    %c0_i32_1 = arith.constant 0 : i32
    return %c0_i32, %c0_i32_0 : i32, i32
  }
  func.func @transform_3(%arg0: i32, %arg1: i32) -> (i32, i32) {
    %c0_i32 = arith.constant 0 : i32
    %c0_i32_0 = arith.constant 0 : i32
    %c0_i32_1 = arith.constant 0 : i32
    return %c0_i32, %c0_i32_0 : i32, i32
  }
  func.func @transform_4(%arg0: i32, %arg1: i32) -> (i32, i32) {
    %c0_i32 = arith.constant 0 : i32
    %c0_i32_0 = arith.constant 0 : i32
    %c0_i32_1 = arith.constant 0 : i32
    return %c0_i32, %c0_i32_0 : i32, i32
  }
  func.func @transform_5(%arg0: i32, %arg1: i32) -> (i32, i32) {
    %c0_i32 = arith.constant 0 : i32
    %c0_i32_0 = arith.constant 0 : i32
    %c0_i32_1 = arith.constant 0 : i32
    return %c0_i32, %c0_i32_0 : i32, i32
  }
  func.func @transform_6(%arg0: i32, %arg1: i32) -> (i32, i32) {
    %c0_i32 = arith.constant 0 : i32
    %c0_i32_0 = arith.constant 0 : i32
    %c0_i32_1 = arith.constant 0 : i32
    return %c0_i32, %c0_i32_0 : i32, i32
  }
  func.func @transform_7(%arg0: i32, %arg1: i32) -> (i32, i32, i32) {
    %c0_i32 = arith.constant 0 : i32
    %c0_i32_0 = arith.constant 0 : i32
    return %arg0, %arg1, %c0_i32 : i32, i32, i32
  }
}

</mosaic_0001>

<bundles_post_ra>
// kernel: tpu_custom_call.1
= control target key start
LH: loop header
LB: loop body
LE: loop exit
PB: predicated region body
PF: predicated region fallthrough
CT: control target
= control target key end

     0   :  { %s2795_s0 = inlined_call_operand.hbm [shape: bf16[2,16,32], index: 0, kind: input, shape index: {}]   ;;  %s2796_s1 = inlined_call_operand.hbm [shape: bf16[32,32], index: 1, kind: input, shape index: {}]   ;;  %s2797_s2 = inlined_call_operand.vmem [shape: f32[1,32], index: 2, kind: input, shape index: {}]   ;;  %s2798_s3 = inlined_call_operand.hbm [shape: bf16[32,64], index: 3, kind: input, shape index: {}]   ;;  %s2799_s4 = inlined_call_operand.vmem [shape: f32[1,64], index: 4, kind: input, shape index: {}]   ;;  %s2800_s5 = inlined_call_operand.hbm [shape: bf16[32,32], index: 5, kind: input, shape index: {}]   ;;  %s2801_s6 = inlined_call_operand.vmem [shape: f32[1,32], index: 6, kind: input, shape index: {}]   ;;  %s2802_s7 = inlined_call_operand.hbm [shape: f32[2,16,32], index: 7, kind: output, shape index: {}]  }
   0x1   :  { %2806 = sst [smem:[#allocation20_spill]] %s2796_s1 }
   0x2   :  { %2807 = sst [smem:[#allocation21_spill]] %s2798_s3 }
   0x3   :  { %2808 = sst [smem:[#allocation22_spill]] %s2800_s5 }
   0x4   :  { %12 = vsyncpa [#allocation8], 0 }
   0x5   :  { %14 = vsyncpa [#allocation8 + $0x1], 0 }
   0x6   :  { %15 = vsyncpa [#allocation11], 0 }
   0x7   :  { %16 = vsyncpa [#allocation14], 0 }
   0x8   :  { %17 = vsyncpa [#allocation9], 0 }
   0x9   :  { %19 = vsyncpa [#allocation9 + $0x1], 0  ;;  %s2251_s24 = smov 0   ;;  %s2253_s25 = smov 0  }
   0xa   :  { %s2255_s26 = smov 0   ;;  %s2257_s27 = smov 0  }
   0xb   :  { %s2259_s28 = smov 0   ;;  %s2261_s29 = smov 0  }
   0xc LB: > { %s1627_s30 = sadd.s32 4294967295, %s2179_s29   ;;  %s1628_s8 = sadd.s32 4294967294, %s2179_s29   ;;  %s2179_s29 = sphi %s2261_s29, %s25_s29   ;;  %s2175_s28 = sphi %s2259_s28, %s2829_s28   ;;  %s2171_s27 = sphi %s2257_s27, %s2828_s27   ;;  %s2167_s26 = sphi %s2255_s26, %s2827_s26   ;;  %s2163_s25 = sphi %s2253_s25, %s2826_s25   ;;  %s2159_s24 = sphi %s2251_s24, %s2825_s24  }
   0xd   : > { %p59_p0 = scmp.ne.s32.totalorder %s2163_s25, %s2159_s24  ;;  %p2285_p1 = scmp.eq.s32.totalorder %s1627_s30, 0 }
   0xe   : > { %p2289_p2 = scmp.eq.s32.totalorder %s1627_s30, 1  ;;  %p217_p3 = scmp.eq.s32.totalorder %s1628_s8, 1 }
   0xf   : > { %p2295_p4 = por %p2285_p1, %p59_p0  ;;  %p1629_p5 = scmp.ge.s32.totalorder %s2179_s29, 1 }
  0x10   : > { %p2300_p6 = por %p217_p3, %p59_p0  ;;  %p224_p7 = scmp.lt.s32.totalorder %s2179_s29, 3 }
  0x11   : > { %s2185_s14 = smov [#allocation10]   ;;  %s2186_s17 = smov [#allocation12]  }
  0x12   : > { %s2812_s12 = scalar_select %p2300_p6, 1, 0 }
  0x13   : > { %p2305_p8 = pnand %p1629_p5, %p224_p7  ;;  %s236_s15 = sshll.u32 %s2185_s14, 4  ;;  %s237_s15 = int_to_ptr.vmem [resolvable:$true] %s236_s15 }
  0x14   : > { %s252_s18 = sshll.u32 %s2186_s17, 4  ;;  %s2187_s19 = smov [#allocation13]   ;;  %s253_s18 = int_to_ptr.vmem [resolvable:$true] %s252_s18 }
  0x15   : > { %p1811_p9 = pneg %p2305_p8  ;;  %s268_s20 = sshll.u32 %s2187_s19, 4  ;;  %s269_s20 = int_to_ptr.vmem [resolvable:$true] %s268_s20 }
  0x16   : > { %s1992_s21 = scalar_lea.vmem %s237_s15, 256  ;;  %p2000_p5 = scmp.lt.s32.totalorder %s237_s15, %s237_s15 }
  0x17   : > { %p2314_p11 = pnand %p1811_p9, %p2285_p1  ;;  %p1993_p13 = scmp.ne.s32.totalorder %s237_s15, %s1992_s21 }
  0x18   : > { %p2001_p7 = scmp.lt.s32.totalorder %s1992_s21, %s1992_s21 }
  0x19   : > { %p1983_p12 = pneg %p2314_p11 }
  0x1a   : > { %p2002_p9 = por %p2001_p7, %p2000_p5 }
  0x1b   : > { %p1995_p0 = pnand %p1993_p13, %p1983_p12 }
  0x1d   : > { %p1996_p3 = pneg %p1995_p0 }
  0x1f   : > { %p2003_p10 = pnand %p2002_p9, %p1996_p3 }
  0x21   : > { %2006 = shalt.err (!%p2003_p10)
}
  0x22   : > { %s2803_s22 = smov 64   ;;  %s2804_s23 = smov 4  }
  0x23   : > { %s2815_s1 = sld [smem:[#allocation20_spill]]  ;;  %s2018_s14 = scalar_lea.vmem %s253_s18, 256 }
  0x24   : > { %p2019_p13 = scmp.ne.s32.totalorder %s253_s18, %s2018_s14  ;;  %p2026_p3 = scmp.lt.s32.totalorder %s253_s18, %s253_s18 }
  0x25   : > { %p2027_p10 = scmp.lt.s32.totalorder %s2018_s14, %s2018_s14 }
  0x26   : > { %p2021_p0 = pnand %p2019_p13, %p1983_p12 }
  0x27   : > { %p2028_p7 = por %p2027_p10, %p2026_p3 }
  0x28   : > { %p2022_p5 = pneg %p2021_p0 }
  0x29   : > { %1814 = dma.hbm_to_vmem [thread:$0]  (!%p2314_p11), %s2815_s1, 256, %s237_s15, [#allocation11], %s2803_s22, %s2803_s22, %s2804_s23  }
  0x2a   : > { %p2029_p9 = pnand %p2028_p7, %p2022_p5 }
  0x2c   : > { %2032 = shalt.err (!%p2029_p9)
}
  0x2d   : > { %s2816_s3 = sld [smem:[#allocation21_spill]]  ;;  %s2044_s15 = scalar_lea.vmem %s269_s20, 256 }
  0x2e   : > { %p2045_p6 = scmp.ne.s32.totalorder %s269_s20, %s2044_s15  ;;  %p2052_p3 = scmp.lt.s32.totalorder %s269_s20, %s269_s20 }
  0x2f   : > { %p2053_p5 = scmp.lt.s32.totalorder %s2044_s15, %s2044_s15 }
  0x30   : > { %p2047_p13 = pnand %p2045_p6, %p1983_p12 }
  0x31   : > { %p2054_p10 = por %p2053_p5, %p2052_p3 }
  0x32   : > { %p2048_p0 = pneg %p2047_p13 }
  0x33   : > { %1817 = dma.hbm_to_vmem [thread:$0]  (!%p2314_p11), %s2816_s3, 256, %s253_s18, [#allocation11], %s2803_s22, %s2803_s22, %s2804_s23  }
  0x34   : > { %p2055_p7 = pnand %p2054_p10, %p2048_p0 }
  0x36   : > { %2058 = shalt.err (!%p2055_p7)
}
  0x37   : > { %s2817_s5 = sld [smem:[#allocation22_spill]]  ;;  %s46_s18 = sadd.s32 1, %s2167_s26 }
  0x38   : > { %s37_s16 = sadd.s32 1, %s2175_s28  ;;  %p53_p6 = scmp.ne.s32.totalorder %s2167_s26, %s2163_s25 }
  0x39   : > { %p39_p12 = scmp.ge.s32.totalorder %s37_s16, 2  ;;  %p54_p9 = scmp.eq.s32.totalorder %s2179_s29, 0 }
  0x3a   : > { %p2360_p13 = por %p2289_p2, %p53_p6  ;;  %p1832_p0 = scmp.lt.s32.totalorder %s2179_s29, 2 }
  0x3b   : > { %s2831_s16 = smov (%p39_p12, %s37_s16), 0  ;;  %p55_p3 = por %p54_p9, %p53_p6 }
  0x3c   : > { %s2818_s8 = scalar_select %p2360_p13, 1, 0 }
  0x3d   : > { %1820 = dma.hbm_to_vmem [thread:$0]  (!%p2314_p11), %s2817_s5, 256, %s269_s20, [#allocation14], %s2803_s22, %s2803_s22, %s2804_s23  }
  0x3e   : > { %s285_s14 = sand.u32 1, %s2167_s26   ;;  %s41_s17 = ssub.s32 %s2175_s28, %s2831_s16 }
  0x3f   : > { %p44_p5 = scmp.eq.s32.totalorder %s41_s17, 0  ;;  %s1634_s20 = sshll.u32 %s285_s14, 3 }
  0x40   : > { %s1686_s19 = sshll.u32 %s2175_s28, 7  ;;  %s289_s22 = scalar_lea.vmem [#allocation7], %s1634_s20 }
  0x41   : > { %s2372_s15 = scalar_select %p44_p5, %s2167_s26, %s46_s18  }
  0x42   : > { %s297_s10 = scalar_lea.hbm %s2795_s0, %s1686_s19  ;;  %s298_s23 = sshll.u32 %s289_s22, 4  ;;  %s299_s23 = int_to_ptr.vmem [resolvable:$true] %s298_s23 }
  0x43   : > { %p2379_p2 = pnand %p1832_p0, %p55_p3  ;;  %s286_s3 = scalar_lea.sflag [#allocation8], %s285_s14 }
  0x44   : > { %s2072_s17 = scalar_lea.vmem %s299_s23, 128  ;;  %s2190_s18 = smov [#allocation7]  }
  0x45   : > { %p2061_p11 = pneg %p2379_p2  ;;  %p2073_p10 = scmp.ne.s32.totalorder %s299_s23, %s2072_s17 }
  0x46   : > { %s2077_s5 = sshll.u32 %s2190_s18, 4  ;;  %s2078_s5 = int_to_ptr.vmem [resolvable:$false] %s2077_s5 }
  0x47   : > { %p2075_p7 = pnand %p2073_p10, %p2061_p11  ;;  %s2079_s19 = scalar_lea.vmem %s2078_s5, 256 }
  0x48   : > { %p2080_p12 = scmp.lt.s32.totalorder %s299_s23, %s2078_s5  ;;  %p2081_p9 = scmp.lt.s32.totalorder %s2079_s19, %s2072_s17 }
  0x49   : > { %p2076_p6 = pneg %p2075_p7 }
  0x4a   : > { %p2082_p5 = por %p2081_p9, %p2080_p12 }
  0x4c   : > { %p2083_p13 = pnand %p2082_p5, %p2076_p6 }
  0x4e   : > { %2086 = shalt.err (!%p2083_p13)
}
  0x4f   : > { %s2820_s22 = smov 4   ;;  %s2821_s20 = smov 64  }
  0x50   : > { %1824 = dma.hbm_to_vmem [thread:$0]  (!%p2379_p2), %s297_s10, 128, %s299_s23, %s286_s3, %s2821_s20, %s2821_s20, %s2820_s22  }
  0x51   : > { %310 = sbr.rel (%p2305_p8) target bundleno = 2045 (0x7fd), region = 48  ;;  %s2393_s14 = sand.u32 (!%p2305_p8), 1, %s2163_s25  }
  0x52   : > { %s1638_s5 = sshll.u32 (!%p2305_p8), %s2393_s14, 3  ;;  %s313_s21 = scalar_lea.sflag (!%p2305_p8), [#allocation8], %s2393_s14 }
  0x53   : > { %s2397_s30 = scalar_lea.vmem (!%p2305_p8), [#allocation7], %s1638_s5 }
  0x56   : > { %2142 = dma.done.wait (%p2295_p4), %s313_s21, 128  }
  0x57   : > { %2144 = vsyncadd (%p2295_p4), %s313_s21, 4294967168 }
  0x58   : > { %2146 = dma.done.wait (%p2285_p1), [#allocation11], 512  }
  0x59   : > { %2148 = vsyncadd (%p2285_p1), [#allocation11], 4294966784 }
  0x5a   : > { %2150 = dma.done.wait (%p2285_p1), [#allocation14], 256  }
  0x5b   : > { %2152 = vsyncadd (%p2285_p1), [#allocation14], 4294967040  ;;  %s1642_s1 = sshll.u32 %s2393_s14, 4  ;;  %vm520_vm0 = vcmask 7168   ;;  %v2191_v0 = vmov 0.0   ;;  %vm393_vm1 = vcmask 261120   ;;  %v539_v7 = vlaneseq }
  0x5c   : > { %1723 = vmatprep.subr.bf16.mxu0 %v2191_v0  ;;  %529 = vst.msk [vmem:[#allocation6] sm:$0xff] %vm520_vm0, %v2191_v0  ;;  %530 = vst.msk [vmem:[#allocation6 + $0x8] sm:$0xff] %vm520_vm0, %v2191_v0  ;;  %1731 = vmatprep.subr.bf16.mxu1 %v2191_v0  ;;  %v2192_v1 = vmov -1e+30   ;;  %vm2193_vm2 = vmmov 0   ;;  %v1917_v2 = vld [vmem:[#allocation12 + $0x8] sm:$0xff]  }
  0x5d   : > { %531 = vst.msk [vmem:[#allocation6 + $0x10] sm:$0xff] %vm520_vm0, %v2191_v0  ;;  %532 = vst.msk [vmem:[#allocation6 + $0x18] sm:$0xff] %vm520_vm0, %v2191_v0  ;;  %1727 = vmatprep.mubr.msk.bf16.mxu0 %vm2193_vm2, %v2191_v0  ;;  %1735 = vmatprep.mubr.msk.bf16.mxu1 %vm2193_vm2, %v2191_v0  ;;  %v1918_v3 = vld [vmem:[#allocation10 + $0x8] sm:$0xff]   ;;  %v1919_v4 = vld [vmem:[#allocation12] sm:$0xff]   ;;  %v2451_v8 = vshrl.u32 %v539_v7, 7  ;;  %v2456_v10 = vand.u32 127, %v539_v7 }
  0x5e   : > { %533 = vst.msk [vmem:[#allocation6 + $0x20] sm:$0xff] %vm520_vm0, %v2191_v0  ;;  %534 = vst.msk [vmem:[#allocation6 + $0x28] sm:$0xff] %vm520_vm0, %v2191_v0  ;;  %1724 = vmatpush3.bf16.msra.mxu0 %v1917_v2  ;;  %1732 = vmatpush3.bf16.msra.mxu1 %v1918_v3  ;;  %v1920_v5 = vld [vmem:[#allocation10] sm:$0xff]   ;;  %v1921_v6 = vld [vmem:[%s2397_s30] sm:$0xff]   ;;  %vm450_vm3 = vcmask 519168   ;;  %s2468_s23 = scalar_lea.vmem [#allocation15], %s1642_s1 }
  0x5f   : > { %535 = vst.msk [vmem:[#allocation6 + $0x30] sm:$0xff] %vm520_vm0, %v2191_v0  ;;  %536 = vst.msk [vmem:[#allocation6 + $0x38] sm:$0xff] %vm520_vm0, %v2191_v0  ;;  %1725 = vmatprep.subr.bf16.mxu0 %v2191_v0  ;;  %1733 = vmatprep.subr.bf16.mxu1 %v2191_v0  ;;  %v2454_v9 = vadd.s32 8, %v2451_v8  ;;  %v1643_v11 = vld [vmem:[%s2799_s4] ss:$0 sm:$0xff]  ;;  %s2470_s10 = smov 0  }
  0x60   : > { %521 = vst.msk [vmem:[#allocation5] sm:$0xff] %vm520_vm0, %v2192_v1  ;;  %522 = vst.msk [vmem:[#allocation5 + $0x8] sm:$0xff] %vm520_vm0, %v2192_v1  ;;  %v1650_v14 = vld [vmem:[%s2797_s2] ss:$0 sm:$0xff] }
  0x61   : > { %523 = vst.msk [vmem:[#allocation5 + $0x10] sm:$0xff] %vm520_vm0, %v2192_v1  ;;  %524 = vst.msk [vmem:[#allocation5 + $0x18] sm:$0xff] %vm520_vm0, %v2192_v1 }
  0x62   : > { %525 = vst.msk [vmem:[#allocation5 + $0x20] sm:$0xff] %vm520_vm0, %v2192_v1  ;;  %526 = vst.msk [vmem:[#allocation5 + $0x28] sm:$0xff] %vm520_vm0, %v2192_v1  ;;  %1726 = vmatpush3.bf16.msra.mxu0 %v1919_v4  ;;  %1734 = vmatpush3.bf16.msra.mxu1 %v1920_v5 }
  0x63   : > { %527 = vst.msk [vmem:[#allocation5 + $0x30] sm:$0xff] %vm520_vm0, %v2192_v1  ;;  %528 = vst.msk [vmem:[#allocation5 + $0x38] sm:$0xff] %vm520_vm0, %v2192_v1 }
  0x64   : > { %537 = vst.msk [vmem:[#allocation4] sm:$0xff] %vm393_vm1, %v2191_v0  ;;  %538 = vst.msk [vmem:[#allocation4 + $0x8] sm:$0xff] %vm393_vm1, %v2191_v0 }
  0x65   : > { %1728 = vmatmul.mubr.msk.bf16.vlgmr.msra.gmra.mxu0 %vm393_vm1, %v1921_v6  ;;  %1736 = vmatmul.mubr.msk.bf16.vlgmr.msra.gmra.mxu1 %vm393_vm1, %v1921_v6 }
 0x125   : > { %v431_v12 = vpop.f32.mrf.mxu0  ;;  %v510_v15 = vpop.f32.mrf.mxu1 }
 0x126   : > { %v432_v13 = vadd.f32 %v1643_v11, %v431_v12  ;;  %v511_v19 = vadd.f32 %v1650_v14, %v510_v15 }
 0x127   : > { %v1729_v16 = vpop.f32.mrf.mxu0  ;;  %v1737_v18 = vpop.f32.mrf.mxu1 }
 0x128   : > { %v1687_v17 = vpack.c.bf16 %v432_v13, %v432_v13  ;;  %v517_v27 = vmul.f32 0.35355338, %v511_v19 }
 0x129   : > { %v434_v20 = vpop.f32.mrf.mxu0  ;;  %v513_v22 = vpop.f32.mrf.mxu1 }
 0x12a   : > { %451 = vst.msk [vmem:[#allocation2] sm:$0xf] %vm450_vm3, %v1687_v17  ;;  %v435_v21 = vadd.f32 %v1643_v11, %v434_v20  ;;  %v514_v23 = vadd.f32 %v1650_v14, %v513_v22 }
 0x12b   : > { %v1730_v24 = vpop.f32.mrf.mxu0  ;;  %v1738_v26 = vpop.f32.mrf.mxu1 }
 0x12c   : > { %v1688_v25 = vpack.c.bf16 %v435_v21, %v435_v21  ;;  %v518_v28 = vmul.f32 0.35355338, %v514_v23 }
 0x12e   : > { %452 = vst.msk [vmem:[#allocation2 + $0x4] sm:$0xf] %vm450_vm3, %v1688_v25  ;;  %v2464_v29 = vpack.c.bf16 %v518_v28, %v517_v27 }
 0x12f LB: >> { %v2194_v30 = vmov 0.0   ;;  %vm2195_vm4 = vmmov 0   ;;  %s1654_s17 = sshll.u32 %s2183_s10, 4  ;;  %vm570_vm5 = vcmask 64512   ;;  %vm622_vm7 = vcmask 130048   ;;  %s2197_s20 = smov 96   ;;  %s2183_s10 = sphi %s2470_s10, %s551_s10  }
 0x130   : >> { %1739 = vmatprep.subr.bf16.mxu0 %v2194_v30  ;;  %1741 = vmatprep.mubr.msk.bf16.mxu0 %vm2195_vm4, %v2194_v30  ;;  %s559_s18 = sshra.s32 %s1654_s17, 3  ;;  %v555_v33 = vstv %s1654_s17  ;;  %v2196_v43 = vmov 0   ;;  %v2506_v44 = vld [vmem:[#allocation5] sm:$0xff]  ;;  %v2511_v47 = vld [vmem:[#allocation5 + $0x8] sm:$0xff]  ;;  %s2198_s5 = smov 120   ;;  %vm916_vm9 = vcmask 130112  }
 0x131   : >> { %1745 = vmatprep.subr.bf16.mxu1 %v2194_v30  ;;  %1747 = vmatprep.mubr.msk.bf16.mxu1 %vm2195_vm4, %v2194_v30  ;;  %s1655_s19 = sshll.u32 %s559_s18, 2  ;;  %v2492_v34 = vadd.s32 %v555_v33, %v2456_v10  ;;  %s2199_s21 = smov 112   ;;  %vm1101_vm10 = vcmask 195712   ;;  %vm1286_vm11 = vcmask 261312  }
 0x132   : >> { %s2482_s22 = scalar_lea.vmem [#allocation2], %s1655_s19  ;;  %1922 = vset.pattern.permute.xlu1 %v2196_v43  ;;  %1923 = vset.pattern.permute.xlu0 %v2196_v43  ;;  %s2200_s30 = smov 104  }
 0x133   : >> { %vm557_vm6 = vcmp.ge.s32.totalorder %v2451_v8, %v2492_v34  ;;  %vm558_vm8 = vcmp.ge.s32.totalorder %v2454_v9, %v2492_v34  ;;  %s2201_s1 = smov 88   ;;  %s2202_s3 = smov 80  }
 0x134   : >> { %s2203_s9 = smov 72   ;;  %s2204_s11 = smov 8  }
 0x135   : >> { %v1924_v31 = vld [vmem:[%s2482_s22] sm:$0xff]   ;;  %s2205_s13 = smov 16   ;;  %s2206_s17 = smov 24  }
 0x136   : >> { %v575_v32 = vsel %vm570_vm5, %v1924_v31, 0  ;;  %v2527_v52 = vld [vmem:[%s2482_s22] sm:$0xff]   ;;  %s551_s10 = sadd.s32 1, %s2183_s10  }
 0x137   : >> { %1740 = vmatpush3.bf16.xpose.msra.mxu0 %v575_v32  ;;  %v2533_v54 = vld [vmem:[%s2482_s22] sm:$0xff]   ;;  %p550_p1 = scmp.ge.s32.totalorder %s551_s10, 1 }
 0x138   : >> { %1757 = vmatprep.subr.bf16.mxu0 %v2194_v30  ;;  %v2538_v55 = vld [vmem:[%s2482_s22] sm:$0xff]   ;;  %vm1317_vm12 = vcmask (%p550_p1), 60416   ;;  %vm1347_vm13 = vcmask (%p550_p1), 126016   ;;  %vm1377_vm14 = vcmask (%p550_p1), 191616   ;;  %vm1407_vm15 = vcmask (%p550_p1), 257216   ;;  %s1697_s19 = sshll.u32 (%p550_p1), %s2171_s27, 8 }
 0x139   : > { %s1502_s22 = sshll.u32 (%p550_p1), %s2468_s23, 4  ;;  %s1487_s27 = scalar_lea.sflag (%p550_p1), [#allocation9], %s2393_s14  ;;  %s2745_s22 = int_to_ptr.vmem [resolvable:$true] %s1502_s22 }
 0x13a   : > { %p2822_p8 = scmp.ne.s32.totalorder (%p550_p1), %s2818_s8, 0 }
 0x13e   : >> { %1742 = vmatmul.mubr.msk.bf16.vlgmr.msra.gmra.mxu0 %vm570_vm5, %v2464_v29 }
 0x13f   : >> { %1759 = vmatprep.mubr.msk.bf16.mxu0 %vm2195_vm4, %v2194_v30 }
 0x1fe   : >> { %v611_v35 = vpop.f32.mrf.mxu0 }
 0x1ff   : >> { %v618_v36 = vsel %vm557_vm6, %v611_v35, -1e+30 }
 0x200   : >> { %v1743_v37 = vpop.f32.mrf.mxu0  ;;  %v623_v38 = vsel %vm622_vm7, %v618_v36, -inf }
 0x201   : >> { %624 = vmax.xlane.f32.xlu0 %v623_v38 }
 0x202   : >> { %v614_v39 = vpop.f32.mrf.mxu0 }
 0x203   : >> { %v619_v40 = vsel %vm558_vm8, %v614_v39, -1e+30 }
 0x204   : >> { %v1744_v41 = vpop.f32.mrf.mxu0  ;;  %v626_v42 = vsel %vm622_vm7, %v619_v40, -inf }
 0x205   : >> { %627 = vmax.xlane.f32.xlu0 %v626_v42 }
 0x21b   : >> { %682 = vrot.lane.b32.xlu0 %v1924_v31, %s2197_s20 }
 0x28a   : >> { %v625_v45 = vpop.xlane.xlu0 %624 }
 0x28b   : >> { %v2509_v46 = vmax.f32 %v2506_v44, %v625_v45 }
 0x28d   : >> { %v631_v48 = vsub.f32 %v2506_v44, %v2509_v46  ;;  %733 = vst.msk [vmem:[#allocation5] sm:$0xff] %vm520_vm0, %v2509_v46  ;;  %639 = vperm.xlu1 %1922, %v2509_v46  }
 0x28e   : >> { %v628_v49 = vpop.xlane.xlu0 %627 }
 0x28f   : >> { %v2519_v50 = vmax.f32 %v2511_v47, %v628_v49  ;;  %v797_v49 = vld [vmem:[#allocation5 + $0x10] sm:$0xff] }
 0x291   : >> { %v632_v51 = vsub.f32 %v2511_v47, %v2519_v50  ;;  %734 = vst.msk [vmem:[#allocation5 + $0x8] sm:$0xff] %vm520_vm0, %v2519_v50  ;;  %644 = vperm.xlu1 %1922, %v2519_v50  }
 0x292   : >> { %v683_v53 = vpop.permute.xlu0 %682 }
 0x293   : >> { %1746 = vmatpush3.bf16.msra.mxu1 %v683_v53  ;;  %v635_v44 = vmul.f32 1.442695, %v632_v51 }
 0x294   : >> { %1751 = vmatprep.subr.bf16.mxu1 %v2194_v30 }
 0x295   : >> { %745 = vrot.lane.b32.xlu1 %v2527_v52, %s2198_s5 }
 0x299   : >> { %738 = vrot.lane.b32.xlu1 %v2464_v29, %s2198_s5 }
 0x29d   : >> { %930 = vrot.lane.b32.xlu1 %v2533_v54, %s2199_s21 }
 0x2a1   : >> { %923 = vrot.lane.b32.xlu1 %v2464_v29, %s2199_s21  ;;  %s2743_s21 = scalar_lea.hbm (%p550_p1), %s2802_s7, %s1697_s19 }
 0x2a5   : >> { %1115 = vrot.lane.b32.xlu1 %v2538_v55, %s2200_s30 }
 0x2a9   : >> { %1108 = vrot.lane.b32.xlu1 %v2464_v29, %s2200_s30  ;;  %s2087_s30 = scalar_lea.vmem (%p550_p1), %s2745_s22, 256 }
 0x2aa   : > { %p2088_p4 = scmp.ne.s32.totalorder (%p550_p1), %s2745_s22, %s2087_s30 }
 0x2ac   : > { %p2089_p13 = pnand (%p550_p1), %p2088_p4, %p2822_p8 }
 0x2ae   : > { %p2090_p0 = pneg (%p550_p1), %p2089_p13 }
 0x308   : >> { %v640_v56 = vpop.permute.xlu1 %639 }
 0x309   : >> { %v647_v57 = vsub.f32 %v618_v36, %v640_v56 }
 0x30b   : >> { %v649_v58 = vmul.f32 1.442695, %v647_v57  ;;  %v798_v57 = vld [vmem:[#allocation5 + $0x18] sm:$0xff] }
 0x30c   : >> { %v645_v59 = vpop.permute.xlu1 %644 }
 0x30d   : >> { %v648_v60 = vsub.f32 %v619_v40, %v645_v59  ;;  %1928 = vpow2.f32 %v649_v58 }
 0x30f   : >> { %v651_v61 = vmul.f32 1.442695, %v648_v60  ;;  %v982_v60 = vld [vmem:[#allocation5 + $0x20] sm:$0xff] }
 0x310   : >> { %v746_v62 = vpop.permute.xlu1 %745 }
 0x311   : >> { %1930 = vpow2.f32 %v651_v61  ;;  %v751_v3 = vsel %vm570_vm5, %v746_v62, 0 }
 0x314   : >> { %v739_v63 = vpop.permute.xlu1 %738 }
 0x318   : >> { %v931_v5 = vpop.permute.xlu1 %930 }
 0x319   : >> { %v936_v7 = vsel %vm570_vm5, %v931_v5, 0  ;;  %v2612_v5 = vld [vmem:[#allocation5 + $0x30] sm:$0xff] }
 0x31a   : >> { %v2542_v1 = vpop.eup %1928 }
 0x31c   : >> { %v924_v6 = vpop.permute.xlu1 %923 }
 0x31e   : >> { %v2544_v2 = vpop.eup %1930 }
 0x31f   : >> { %v681_v4 = vpack.c.bf16 %v2544_v2, %v2542_v1  ;;  %v660_v46 = vsel %vm622_vm7, %v2544_v2, 0.0 }
 0x320   : >> { %v1116_v11 = vpop.permute.xlu1 %1115 }
 0x321   : >> { %1748 = vmatmul.mubr.msk.bf16.vlgmr.msra.gmra.mxu1 %vm622_vm7, %v681_v4  ;;  %v1121_v12 = vsel %vm570_vm5, %v1116_v11, 0 }
 0x322   : >> { %1752 = vmatpush3.bf16.xpose.msra.mxu1 %v751_v3  ;;  %1753 = vmatprep.mubr.msk.bf16.mxu1 %vm2195_vm4, %v2194_v30 }
 0x323   : >> { %1763 = vmatprep.subr.bf16.mxu1 %v2194_v30 }
 0x324   : >> { %v1109_v13 = vpop.permute.xlu1 %1108 }
 0x329   : >> { %1754 = vmatmul.mubr.msk.bf16.vlgmr.msra.gmra.mxu1 %vm570_vm5, %v739_v63  ;;  %v983_v63 = vld [vmem:[#allocation5 + $0x28] sm:$0xff] }
 0x32a   : >> { %1764 = vmatpush3.bf16.xpose.msra.mxu1 %v936_v7  ;;  %1765 = vmatprep.mubr.msk.bf16.mxu1 %vm2195_vm4, %v2194_v30 }
 0x32b   : >> { %1775 = vmatprep.subr.bf16.mxu1 %v2194_v30 }
 0x331   : >> { %1766 = vmatmul.mubr.msk.bf16.vlgmr.msra.gmra.mxu1 %vm570_vm5, %v924_v6 }
 0x332   : >> { %1776 = vmatpush3.bf16.xpose.msra.mxu1 %v1121_v12  ;;  %1777 = vmatprep.mubr.msk.bf16.mxu1 %vm2195_vm4, %v2194_v30  ;;  %v2618_v12 = vld [vmem:[#allocation5 + $0x38] sm:$0xff] }
 0x339   : >> { %1778 = vmatmul.mubr.msk.bf16.vlgmr.msra.gmra.mxu1 %vm570_vm5, %v1109_v13 }
 0x3e1   : >> { %v2563_v14 = vpop.f32.mrf.mxu1 }
 0x3e3   : >> { %v1749_v15 = vpop.f32.mrf.mxu1 }
 0x3e5   : >> { %v2565_v16 = vpop.f32.mrf.mxu1 }
 0x3e7   : >> { %v1750_v17 = vpop.f32.mrf.mxu1 }
 0x3e9   : >> { %v787_v18 = vpop.f32.mrf.mxu1 }
 0x3ea   : >> { %v2570_v19 = vsel %vm557_vm6, %v787_v18, -1e+30 }
 0x3eb   : >> { %v1755_v20 = vpop.f32.mrf.mxu1  ;;  %v799_v21 = vsel %vm622_vm7, %v2570_v19, -inf }
 0x3ec   : >> { %800 = vmax.xlane.f32.xlu0 %v799_v21  ;;  %v633_v20 = vmul.f32 1.442695, %v631_v48 }
 0x3ed   : >> { %v790_v22 = vpop.f32.mrf.mxu1 }
 0x3ee   : >> { %v2577_v23 = vsel %vm558_vm8, %v790_v22, -1e+30  ;;  %1932 = vpow2.f32 %v633_v20 }
 0x3ef   : >> { %v1756_v24 = vpop.f32.mrf.mxu1  ;;  %v802_v25 = vsel %vm622_vm7, %v2577_v23, -inf }
 0x3f0   : >> { %803 = vmax.xlane.f32.xlu1 %v802_v25 }
 0x3f1   : >> { %v972_v26 = vpop.f32.mrf.mxu1 }
 0x3f2   : >> { %v2584_v27 = vsel %vm557_vm6, %v972_v26, -1e+30 }
 0x3f3   : >> { %v1767_v28 = vpop.f32.mrf.mxu1  ;;  %v984_v31 = vsel %vm622_vm7, %v2584_v27, -inf }
 0x3f4   : >> { %985 = vmax.xlane.f32.xlu0 %v984_v31 }
 0x3f5   : >> { %v975_v32 = vpop.f32.mrf.mxu1 }
 0x3f6   : >> { %v2591_v33 = vsel %vm558_vm8, %v975_v32, -1e+30 }
 0x3f7   : >> { %v1768_v35 = vpop.f32.mrf.mxu1  ;;  %v987_v36 = vsel %vm622_vm7, %v2591_v33, -inf }
 0x3f8   : >> { %988 = vmax.xlane.f32.xlu0 %v987_v36 }
 0x3f9   : >> { %v1157_v37 = vpop.f32.mrf.mxu1 }
 0x3fa   : >> { %v2598_v38 = vsel %vm557_vm6, %v1157_v37, -1e+30 }
 0x3fb   : >> { %v1779_v39 = vpop.f32.mrf.mxu1  ;;  %v1169_v40 = vsel %vm622_vm7, %v2598_v38, -inf  ;;  %v2641_v26 = vpop.eup %1932 }
 0x3fc   : >> { %1170 = vmax.xlane.f32.xlu1 %v1169_v40 }
 0x3fd   : >> { %v1160_v41 = vpop.f32.mrf.mxu1 }
 0x3fe   : >> { %v2605_v42 = vsel %vm558_vm8, %v1160_v41, -1e+30 }
 0x3ff   : >> { %v1780_v43 = vpop.f32.mrf.mxu1  ;;  %v1172_v45 = vsel %vm622_vm7, %v2605_v42, -inf }
 0x400   : >> { %1173 = vmax.xlane.f32.xlu0 %v1172_v45 }
 0x475   : >> { %v801_v53 = vpop.xlane.xlu0 %800 }
 0x476   : >> { %v805_v56 = vmax.f32 %v797_v49, %v801_v53 }
 0x478   : >> { %919 = vst.msk [vmem:[#allocation5 + $0x10] sm:$0xff] %vm520_vm0, %v805_v56  ;;  %815 = vperm.xlu1 %1922, %v805_v56   ;;  %v807_v21 = vsub.f32 %v797_v49, %v805_v56 }
 0x479   : >> { %v804_v58 = vpop.xlane.xlu1 %803 }
 0x47a   : >> { %v806_v59 = vmax.f32 %v798_v57, %v804_v58  ;;  %v809_v22 = vmul.f32 1.442695, %v807_v21 }
 0x47c   : >> { %v808_v61 = vsub.f32 %v798_v57, %v806_v59  ;;  %920 = vst.msk [vmem:[#allocation5 + $0x18] sm:$0xff] %vm520_vm0, %v806_v59  ;;  %820 = vperm.xlu0 %1923, %v806_v59   ;;  %1934 = vpow2.f32 %v809_v22 }
 0x47d   : >> { %v986_v34 = vpop.xlane.xlu0 %985 }
 0x47e   : >> { %v990_v62 = vmax.f32 %v982_v60, %v986_v34  ;;  %v811_v48 = vmul.f32 1.442695, %v808_v61 }
 0x480   : >> { %1104 = vst.msk [vmem:[#allocation5 + $0x20] sm:$0xff] %vm520_vm0, %v990_v62  ;;  %1000 = vperm.xlu1 %1922, %v990_v62   ;;  %v992_v24 = vsub.f32 %v982_v60, %v990_v62 }
 0x481   : >> { %v989_v3 = vpop.xlane.xlu0 %988 }
 0x482   : >> { %v991_v4 = vmax.f32 %v983_v63, %v989_v3  ;;  %v994_v25 = vmul.f32 1.442695, %v992_v24  ;;  %v667_v24 = vld [vmem:[#allocation4] sm:$0xff] }
 0x484   : >> { %v993_v6 = vsub.f32 %v983_v63, %v991_v4  ;;  %1105 = vst.msk [vmem:[#allocation5 + $0x28] sm:$0xff] %vm520_vm0, %v991_v4  ;;  %1005 = vperm.xlu1 %1922, %v991_v4   ;;  %1936 = vpow2.f32 %v994_v25 }
 0x485   : >> { %v1171_v7 = vpop.xlane.xlu1 %1170  ;;  %1938 = vpow2.f32 %v635_v44 }
 0x486   : >> { %v2616_v11 = vmax.f32 %v2612_v5, %v1171_v7  ;;  %1940 = vpow2.f32 %v811_v48 }
 0x488   : >> { %859 = vrot.lane.b32.xlu1 %v2527_v52, %s2201_s1  ;;  %v1177_v13 = vsub.f32 %v2612_v5, %v2616_v11  ;;  %1289 = vst.msk [vmem:[#allocation5 + $0x30] sm:$0xff] %vm520_vm0, %v2616_v11  ;;  %v657_v52 = vsel %vm622_vm7, %v2542_v1, 0.0  ;;  %v996_v1 = vmul.f32 1.442695, %v993_v6  ;;  %s2208_s1 = smov (%p550_p1), [#allocation15]  }
 0x489   : >> { %v1174_v15 = vpop.xlane.xlu0 %1173 }
 0x48a   : >> { %v2626_v17 = vmax.f32 %v2618_v12, %v1174_v15  ;;  %1942 = vpow2.f32 %v996_v1 }
 0x48c   : >> { %v1178_v18 = vsub.f32 %v2618_v12, %v2626_v17  ;;  %1290 = vst.msk [vmem:[#allocation5 + $0x38] sm:$0xff] %vm520_vm0, %v2626_v17  ;;  %1185 = vperm.xlu1 %1922, %v2616_v11  }
 0x490   : >> { %1190 = vperm.xlu1 %1922, %v2626_v17  }
 0x494   : >> { %1044 = vrot.lane.b32.xlu1 %v2533_v54, %s2202_s3  ;;  %v2644_v54 = vpop.eup %1934  ;;  %s2091_s3 = sshll.u32 (%p550_p1), %s2208_s1, 4  ;;  %s2092_s3 = int_to_ptr.vmem [resolvable:$false] %s2091_s3 }
 0x495   : > { %p2094_p3 = scmp.lt.s32.totalorder (%p550_p1), %s2745_s22, %s2092_s3 }
 0x498   : >> { %1229 = vrot.lane.b32.xlu1 %v2538_v55, %s2203_s9  ;;  %v2647_v55 = vpop.eup %1936  ;;  %s2093_s9 = scalar_lea.vmem (%p550_p1), %s2092_s3, 512 }
 0x499   : >> { %v2655_v28 = vpop.eup %1938  ;;  %p2095_p2 = scmp.lt.s32.totalorder (%p550_p1), %s2093_s9, %s2087_s30 }
 0x49a   : >> { %v2658_v31 = vpop.eup %1940 }
 0x49b   : >> { %658 = vadd.xlane.f32.xlu0 %v657_v52  ;;  %v2661_v32 = vpop.eup %1942  ;;  %v653_v52 = vld [vmem:[#allocation6] sm:$0xff]  ;;  %p2096_p11 = por (%p550_p1), %p2095_p2, %p2094_p3 }
 0x49c   : >> { %v655_v20 = vmul.f32 %v2641_v26, %v653_v52 }
 0x49d   : > { %p2097_p10 = pnand (%p550_p1), %p2096_p11, %p2090_p0 }
 0x4b1   : >> { %671 = vperm.xlu0 %1923, %v2641_v26  }
 0x4b5   : >> { %848 = vperm.xlu0 %1923, %v2644_v54  }
 0x4b9   : >> { %1033 = vperm.xlu0 %1923, %v2647_v55  }
 0x4bc   : >> { %661 = vadd.xlane.f32.xlu1 %v660_v46  ;;  %v654_v46 = vld [vmem:[#allocation6 + $0x8] sm:$0xff] }
 0x4bd   : >> { %v656_v48 = vmul.f32 %v2655_v28, %v654_v46 }
 0x4cd   : >> { %676 = vperm.xlu1 %1922, %v2655_v28  }
 0x4d1   : >> { %853 = vperm.xlu1 %1922, %v2658_v31  }
 0x4d5   : >> { %1038 = vperm.xlu1 %1922, %v2661_v32  }
 0x4f3   : >> { %v816_v47 = vpop.permute.xlu1 %815 }
 0x4f4   : >> { %v823_v50 = vsub.f32 %v2570_v19, %v816_v47 }
 0x4f6   : >> { %v825_v51 = vmul.f32 1.442695, %v823_v50  ;;  %v668_v50 = vld [vmem:[#allocation4 + $0x8] sm:$0xff] }
 0x4f7   : >> { %v821_v2 = vpop.permute.xlu0 %820 }
 0x4f8   : >> { %1944 = vpow2.f32 %v825_v51  ;;  %v824_v35 = vsub.f32 %v2577_v23, %v821_v2 }
 0x4fa   : >> { %v827_v36 = vmul.f32 1.442695, %v824_v35 }
 0x4fb   : >> { %v1001_v37 = vpop.permute.xlu1 %1000 }
 0x4fc   : >> { %1946 = vpow2.f32 %v827_v36  ;;  %v1008_v39 = vsub.f32 %v2584_v27, %v1001_v37 }
 0x4fe   : >> { %v1010_v40 = vmul.f32 1.442695, %v1008_v39 }
 0x4ff   : >> { %v1006_v41 = vpop.permute.xlu1 %1005 }
 0x500   : >> { %1948 = vpow2.f32 %v1010_v40  ;;  %v1009_v43 = vsub.f32 %v2591_v33, %v1006_v41  ;;  %v831_v41 = vld [vmem:[#allocation6 + $0x18] sm:$0xff] }
 0x502   : >> { %v1012_v45 = vmul.f32 1.442695, %v1009_v43 }
 0x503   : >> { %v860_v49 = vpop.permute.xlu1 %859 }
 0x504   : >> { %1950 = vpow2.f32 %v1012_v45  ;;  %1758 = vmatpush3.bf16.msra.mxu0 %v860_v49  ;;  %v833_v45 = vmul.f32 %v2658_v31, %v831_v41 }
 0x505   : >> { %v1945_v19 = vpop.eup %1944  ;;  %1769 = vmatprep.subr.bf16.mxu0 %v2194_v30 }
 0x506   : >> { %v834_v53 = vsel %vm622_vm7, %v1945_v19, 0.0 }
 0x507   : >> { %v1186_v23 = vpop.permute.xlu1 %1185  ;;  %835 = vadd.xlane.f32.xlu0 %v834_v53 }
 0x508   : >> { %v1193_v56 = vsub.f32 %v2598_v38, %v1186_v23 }
 0x509   : >> { %v1947_v57 = vpop.eup %1946 }
 0x50a   : >> { %v837_v27 = vsel %vm622_vm7, %v1947_v57, 0.0  ;;  %v858_v58 = vpack.c.bf16 %v1947_v57, %v1945_v19  ;;  %v1195_v59 = vmul.f32 1.442695, %v1193_v56  ;;  %v1016_v56 = vld [vmem:[#allocation6 + $0x28] sm:$0xff] }
 0x50b   : >> { %v1191_v60 = vpop.permute.xlu1 %1190  ;;  %838 = vadd.xlane.f32.xlu1 %v837_v27 }
 0x50c   : >> { %v1194_v33 = vsub.f32 %v2605_v42, %v1191_v60  ;;  %1760 = vmatmul.mubr.msk.bf16.vlgmr.msra.gmra.mxu0 %vm622_vm7, %v858_v58  ;;  %1952 = vpow2.f32 %v1195_v59 }
 0x50d   : >> { %v1949_v61 = vpop.eup %1948  ;;  %1771 = vmatprep.mubr.msk.bf16.mxu0 %vm2195_vm4, %v2194_v30 }
 0x50e   : >> { %v1197_v34 = vmul.f32 1.442695, %v1194_v33  ;;  %v1019_v62 = vsel %vm622_vm7, %v1949_v61, 0.0 }
 0x50f   : >> { %1020 = vadd.xlane.f32.xlu0 %v1019_v62  ;;  %v1045_v38 = vpop.permute.xlu1 %1044 }
 0x510   : >> { %1954 = vpow2.f32 %v1197_v34  ;;  %1770 = vmatpush3.bf16.msra.mxu0 %v1045_v38 }
 0x511   : >> { %v1951_v63 = vpop.eup %1950  ;;  %1781 = vmatprep.subr.bf16.mxu0 %v2194_v30 }
 0x512   : >> { %v1022_v3 = vsel %vm622_vm7, %v1951_v63, 0.0  ;;  %v1043_v42 = vpack.c.bf16 %v1951_v63, %v1949_v61 }
 0x513   : >> { %1023 = vadd.xlane.f32.xlu1 %v1022_v3  ;;  %v1230_v4 = vpop.permute.xlu1 %1229 }
 0x514   : >> { %1772 = vmatmul.mubr.msk.bf16.vlgmr.msra.gmra.mxu0 %vm622_vm7, %v1043_v42 }
 0x515   : >> { %1782 = vmatpush3.bf16.msra.mxu0 %v1230_v4  ;;  %1783 = vmatprep.mubr.msk.bf16.mxu0 %vm2195_vm4, %v2194_v30  ;;  %v1179_v4 = vmul.f32 1.442695, %v1177_v13 }
 0x516   : > { %1787 = vmatprep.subr.bf16.mxu0 (%p550_p1), %v2191_v0 }
 0x517   : >> { %1956 = vpow2.f32 %v1179_v4 }
 0x519   : >> { %v2682_v6 = vpop.eup %1952 }
 0x51a   : >> { %v1204_v42 = vsel %vm622_vm7, %v2682_v6, 0.0 }
 0x51d   : >> { %v2684_v7 = vpop.eup %1954 }
 0x51e   : >> { %v1228_v15 = vpack.c.bf16 %v2684_v7, %v2682_v6  ;;  %v1207_v52 = vsel %vm622_vm7, %v2684_v7, 0.0 }
 0x520   : >> { %1784 = vmatmul.mubr.msk.bf16.vlgmr.msra.gmra.mxu0 %vm622_vm7, %v1228_v15  ;;  %v1181_v15 = vmul.f32 1.442695, %v1178_v18 }
 0x521   : > { %1791 = vmatprep.mubr.msk.bf16.mxu0 (%p550_p1), %vm2193_vm2, %v2191_v0 }
 0x522   : >> { %1958 = vpow2.f32 %v1181_v15 }
 0x524   : >> { %v659_v21 = vpop.xlane.xlu0 %658 }
 0x525   : >> { %v663_v22 = vadd.f32 %v659_v21, %v655_v20  ;;  %v1957_v20 = vpop.eup %1956 }
 0x527   : >> { %665 = vst.msk [vmem:[#allocation6] sm:$0xff] %vm520_vm0, %v663_v22 }
 0x52c   : >> { %v672_v25 = vpop.permute.xlu0 %671 }
 0x52d   : >> { %v679_v44 = vmul.f32 %v672_v25, %v667_v24 }
 0x52f   : >> { %v729_v30 = vadd.f32 %v2563_v14, %v679_v44  ;;  %v830_v14 = vld [vmem:[#allocation6 + $0x10] sm:$0xff]  ;;  %v1959_v6 = vpop.eup %1958 }
 0x530   : >> { %v849_v35 = vpop.permute.xlu0 %848  ;;  %v832_v39 = vmul.f32 %v2644_v54, %v830_v14  ;;  %v1018_v54 = vmul.f32 %v2661_v32, %v1016_v56 }
 0x531   : >> { %731 = vst.msk [vmem:[#allocation4] sm:$0xff] %vm570_vm5, %v729_v30  ;;  %v1200_v30 = vld [vmem:[#allocation6 + $0x30] sm:$0xff] }
 0x532   : >> { %v1202_v46 = vmul.f32 %v1957_v20, %v1200_v30 }
 0x534   : >> { %v2697_v37 = vpop.permute.xlu0 %1033 }
 0x538   : >> { %v844_v5 = vld [vmem:[#allocation4] sm:$0xff] }
 0x539   : >> { %v856_v11 = vmul.f32 %v849_v35, %v844_v5  ;;  %v1201_v35 = vld [vmem:[#allocation6 + $0x38] sm:$0xff] }
 0x545   : >> { %v662_v1 = vpop.xlane.xlu1 %661 }
 0x546   : >> { %v664_v47 = vadd.f32 %v662_v1, %v656_v48 }
 0x548   : >> { %666 = vst.msk [vmem:[#allocation6 + $0x8] sm:$0xff] %vm520_vm0, %v664_v47 }
 0x549   : >> { %v677_v26 = vpop.permute.xlu1 %676 }
 0x54a   : >> { %v680_v51 = vmul.f32 %v677_v26, %v668_v50 }
 0x54c   : >> { %v730_v2 = vadd.f32 %v2565_v16, %v680_v51  ;;  %v1015_v16 = vld [vmem:[#allocation6 + $0x20] sm:$0xff] }
 0x54d   : >> { %v854_v36 = vpop.permute.xlu1 %853  ;;  %v1017_v53 = vmul.f32 %v2647_v55, %v1015_v16 }
 0x54e   : >> { %732 = vst.msk [vmem:[#allocation4 + $0x8] sm:$0xff] %vm570_vm5, %v730_v2 }
 0x551   : >> { %v2700_v40 = vpop.permute.xlu1 %1038 }
 0x555   : >> { %v845_v13 = vld [vmem:[#allocation4 + $0x8] sm:$0xff] }
 0x556   : >> { %v857_v17 = vmul.f32 %v854_v36, %v845_v13 }
 0x590   : >> { %v836_v28 = vpop.xlane.xlu0 %835 }
 0x591   : >> { %v840_v43 = vadd.f32 %v836_v28, %v832_v39 }
 0x593   : >> { %842 = vst.msk [vmem:[#allocation6 + $0x10] sm:$0xff] %vm520_vm0, %v840_v43 }
 0x594   : >> { %v839_v49 = vpop.xlane.xlu1 %838 }
 0x595   : >> { %v841_v19 = vadd.f32 %v839_v49, %v833_v45 }
 0x597   : >> { %843 = vst.msk [vmem:[#allocation6 + $0x18] sm:$0xff] %vm520_vm0, %v841_v19 }
 0x598   : >> { %v1021_v23 = vpop.xlane.xlu0 %1020 }
 0x599   : >> { %v1025_v57 = vadd.f32 %v1021_v23, %v1017_v53  ;;  %v1291_v23 = vld [vmem:[#allocation6] sm:$0xff] (%p550_p1) }
 0x59a   : > { %v1321_v53 = vld [vmem:[#allocation6 + $0x10] sm:$0xff] (%p550_p1) }
 0x59b   : >> { %1027 = vst.msk [vmem:[#allocation6 + $0x20] sm:$0xff] %vm520_vm0, %v1025_v57  ;;  %v2207_v57 = vmov (%p550_p1), 0   ;;  %1965 = vrcp.f32 (%p550_p1), %v1321_v53 }
 0x59c   : >> { %v1024_v27 = vpop.xlane.xlu1 %1023  ;;  %1967 = vrcp.f32 (%p550_p1), %v1291_v23 }
 0x59d   : >> { %v1026_v58 = vadd.f32 %v1024_v27, %v1018_v54  ;;  %v1292_v54 = vld [vmem:[#allocation6 + $0x8] sm:$0xff] (%p550_p1) }
 0x59e   : > { %v1322_v56 = vld [vmem:[#allocation6 + $0x18] sm:$0xff] (%p550_p1) }
 0x59f   : >> { %1028 = vst.msk [vmem:[#allocation6 + $0x28] sm:$0xff] %vm520_vm0, %v1026_v58  ;;  %1969 = vrcp.f32 (%p550_p1), %v1322_v56 }
 0x5a0   : > { %1971 = vrcp.f32 (%p550_p1), %v1292_v54 }
 0x5a2   : > { %v1351_v58 = vld [vmem:[#allocation6 + $0x20] sm:$0xff] (%p550_p1) }
 0x5a6   : > { %v1352_v27 = vld [vmem:[#allocation6 + $0x28] sm:$0xff] (%p550_p1) }
 0x5a7   : > { %1973 = vrcp.f32 (%p550_p1), %v1352_v27 }
 0x5a8   : > { %1975 = vrcp.f32 (%p550_p1), %v1351_v58  ;;  %v1966_v10 = vpop.eup (%p550_p1), %1965 }
 0x5a9   : > { %v1968_v29 = vpop.eup (%p550_p1), %1967 }
 0x5cc   : >> { %v899_v59 = vpop.f32.mrf.mxu0 }
 0x5cd   : >> { %908 = vrot.lane.b32.xlu0 %v899_v59, %s2204_s11  ;;  %v1970_v59 = vpop.eup (%p550_p1), %1969 }
 0x5ce   : >> { %v1761_v31 = vpop.f32.mrf.mxu0 }
 0x5cf   : > { %v1972_v31 = vpop.eup (%p550_p1), %1971 }
 0x5d0   : >> { %v902_v60 = vpop.f32.mrf.mxu0 }
 0x5d1   : >> { %910 = vrot.lane.b32.xlu1 %v902_v60, %s2204_s11  ;;  %v1974_v60 = vpop.eup (%p550_p1), %1973 }
 0x5d2   : >> { %v1762_v33 = vpop.f32.mrf.mxu0 }
 0x5d3   : > { %v1976_v33 = vpop.eup (%p550_p1), %1975 }
 0x5d4   : >> { %v1084_v61 = vpop.f32.mrf.mxu0 }
 0x5d6   : >> { %v1773_v55 = vpop.f32.mrf.mxu0 }
 0x5d8   : >> { %v1087_v34 = vpop.f32.mrf.mxu0 }
 0x5d9   : >> { %1095 = vrot.lane.b32.xlu1 %v1087_v34, %s2205_s13  ;;  %v1962_v34 = vld [vmem:[#allocation13 + $0x8] sm:$0xff] (%p550_p1)  }
 0x5da   : >> { %v1774_v62 = vpop.f32.mrf.mxu0  ;;  %1788 = vmatpush3.bf16.msra.mxu0 (%p550_p1), %v1962_v34 }
 0x5db   : > { %v1963_v62 = vld [vmem:[#allocation13] sm:$0xff] (%p550_p1)   ;;  %1789 = vmatprep.subr.bf16.mxu0 (%p550_p1), %v2191_v0 }
 0x5de   : > { %1790 = vmatpush3.bf16.msra.mxu0 (%p550_p1), %v1963_v62 }
 0x5e0   : >> { %v1269_v38 = vpop.f32.mrf.mxu0 }
 0x5e2   : >> { %v1785_v63 = vpop.f32.mrf.mxu0 }
 0x5e4   : >> { %v1272_v32 = vpop.f32.mrf.mxu0 }
 0x5e6   : >> { %v1786_v3 = vpop.f32.mrf.mxu0 }
 0x5ec   : >> { %1205 = vadd.xlane.f32.xlu0 %v1204_v42 }
 0x5fd   : >> { %1208 = vadd.xlane.f32.xlu1 %v1207_v52 }
 0x602   : >> { %1093 = vrot.lane.b32.xlu0 %v1084_v61, %s2205_s13 }
 0x606   : >> { %1218 = vperm.xlu0 %1923, %v1957_v20  }
 0x60a   : >> { %1278 = vrot.lane.b32.xlu0 %v1269_v38, %s2206_s17 }
 0x60b   : > { %1960 = vset.pattern.permute.xlu0 (%p550_p1), %v2207_v57 }
 0x60e   : >> { %1223 = vperm.xlu1 %1922, %v1959_v6   ;;  %1299 = vperm.xlu0 (%p550_p1), %1960, %v1968_v29  }
 0x612   : >> { %1280 = vrot.lane.b32.xlu1 %v1272_v32, %s2206_s17  ;;  %1304 = vperm.xlu0 (%p550_p1), %1960, %v1972_v31  }
 0x613   : > { %1961 = vset.pattern.permute.xlu1 (%p550_p1), %v2207_v57 }
 0x616   : > { %1329 = vperm.xlu1 (%p550_p1), %1961, %v1966_v10   ;;  %1359 = vperm.xlu0 (%p550_p1), %1960, %v1976_v33  }
 0x61a   : > { %1334 = vperm.xlu1 (%p550_p1), %1961, %v1970_v59  }
 0x61e   : > { %1364 = vperm.xlu1 (%p550_p1), %1961, %v1974_v60  }
 0x63f   : >> { %v909_v21 = vpop.permute.xlu0 %908 }
 0x640   : >> { %v914_v12 = vadd.f32 %v909_v21, %v856_v11 }
 0x642   : >> { %917 = vst.msk [vmem:[#allocation4] sm:$0xff] %vm916_vm9, %v914_v12 }
 0x643   : >> { %v911_v18 = vpop.permute.xlu1 %910 }
 0x644   : >> { %v915_v7 = vadd.f32 %v911_v18, %v857_v17 }
 0x646   : >> { %918 = vst.msk [vmem:[#allocation4 + $0x8] sm:$0xff] %vm916_vm9, %v915_v7 }
 0x649   : >> { %v1029_v1 = vld [vmem:[#allocation4] sm:$0xff] }
 0x64a   : >> { %v1041_v50 = vmul.f32 %v2697_v37, %v1029_v1 }
 0x64b   : >> { %v1096_v25 = vpop.permute.xlu1 %1095 }
 0x64d   : >> { %v1030_v22 = vld [vmem:[#allocation4 + $0x8] sm:$0xff] }
 0x64e   : >> { %v1042_v24 = vmul.f32 %v2700_v40, %v1030_v22  ;;  %v1203_v40 = vmul.f32 %v1959_v6, %v1201_v35 }
 0x650   : >> { %v1100_v44 = vadd.f32 %v1096_v25, %v1042_v24 }
 0x652   : >> { %1103 = vst.msk [vmem:[#allocation4 + $0x8] sm:$0xff] %vm1101_vm10, %v1100_v44 }
 0x659   : >> { %v1215_v49 = vld [vmem:[#allocation4 + $0x8] sm:$0xff] }
 0x675   : >> { %v1206_v48 = vpop.xlane.xlu0 %1205 }
 0x676   : >> { %v1210_v47 = vadd.f32 %v1206_v48, %v1202_v46 }
 0x678   : >> { %1212 = vst.msk [vmem:[#allocation6 + $0x30] sm:$0xff] %vm520_vm0, %v1210_v47  ;;  %v1676_v47 = vld [vmem:[%s2801_s6] ss:$0 sm:$0xff] (%p550_p1) }
 0x679   : >> { %v1094_v26 = vpop.permute.xlu0 %1093 }
 0x67a   : >> { %v1099_v51 = vadd.f32 %v1094_v26, %v1041_v50 }
 0x67c   : >> { %1102 = vst.msk [vmem:[#allocation4] sm:$0xff] %vm1101_vm10, %v1099_v51 }
 0x67f   : > { %v1381_v9 = vld [vmem:[#allocation6 + $0x30] sm:$0xff] (%p550_p1) }
 0x681   : >> { %v1219_v2 = vpop.permute.xlu0 %1218 }
 0x683   : >> { %v1214_v36 = vld [vmem:[#allocation4] sm:$0xff] }
 0x684   : >> { %v1226_v14 = vmul.f32 %v1219_v2, %v1214_v36 }
 0x685   : >> { %v1279_v39 = vpop.permute.xlu0 %1278 }
 0x686   : >> { %v1284_v28 = vadd.f32 %v1279_v39, %v1226_v14  ;;  %v1209_v41 = vpop.xlane.xlu1 %1208 }
 0x687   : >> { %v1211_v43 = vadd.f32 %v1209_v41, %v1203_v40 }
 0x688   : >> { %1287 = vst.msk [vmem:[#allocation4] sm:$0xff] %vm1286_vm11, %v1284_v28 }
 0x689   : >> { %1213 = vst.msk [vmem:[#allocation6 + $0x38] sm:$0xff] %vm520_vm0, %v1211_v43  ;;  %v1300_v3 = vpop.permute.xlu0 (%p550_p1), %1299 }
 0x68a   : >> { %v1224_v45 = vpop.permute.xlu1 %1223 }
 0x68b   : >> { %v1227_v16 = vmul.f32 %v1224_v45, %v1215_v49 }
 0x68d   : > { %553 = sbr.rel (!%p550_p1) target bundleno = 303 (0x12f), region = 123  ;;  %v1305_v5 = vpop.permute.xlu0 (%p550_p1), %1304 }
 0x68e   : >> { %v1281_v37 = vpop.permute.xlu1 %1280 }
 0x68f   : >> { %v1285_v19 = vadd.f32 %v1281_v37, %v1227_v16  ;;  %v1325_v38 = vld [vmem:[#allocation4] sm:$0xff] (%p550_p1) }
 0x690   : > { %v1382_v8 = vld [vmem:[#allocation6 + $0x38] sm:$0xff] (%p550_p1)  ;;  %v1307_v42 = vmul.f32 (%p550_p1), %v1325_v38, %v1300_v3 }
 0x691   : >> { %1288 = vst.msk [vmem:[#allocation4 + $0x8] sm:$0xff] %vm1286_vm11, %v1285_v19  ;;  %1977 = vrcp.f32 (%p550_p1), %v1382_v8  ;;  %v1360_v17 = vpop.permute.xlu0 (%p550_p1), %1359 }
 0x692   : > { %1979 = vrcp.f32 %v1381_v9  ;;  %v1330_v63 = vpop.permute.xlu1 %1329  ;;  %v1689_v52 = vpack.c.bf16 %v1307_v42, %v1307_v42  ;;  %v1367_v18 = vmul.f32 %v1360_v17, %v1325_v38 }
 0x693   : > { %v1337_v32 = vmul.f32 %v1330_v63, %v1325_v38 }
 0x694   : > { %1318 = vst.msk [vmem:[#allocation3] sm:$0xf] %vm1317_vm12, %v1689_v52  ;;  %v1693_v22 = vpack.c.bf16 %v1367_v18, %v1367_v18 }
 0x695   : > { %v1691_v15 = vpack.c.bf16 %v1337_v32, %v1337_v32 }
 0x696   : > { %v1335_v20 = vpop.permute.xlu1 %1334 }
 0x697   : > { %1348 = vst.msk [vmem:[#allocation3] sm:$0xf] %vm1347_vm13, %v1691_v15 }
 0x698   : > { %v1326_v4 = vld [vmem:[#allocation4 + $0x8] sm:$0xff]  ;;  %1378 = vst.msk [vmem:[#allocation3] sm:$0xf] %vm1377_vm14, %v1693_v22 }
 0x699   : > { %v1338_v6 = vmul.f32 %v1335_v20, %v1326_v4  ;;  %v1308_v11 = vmul.f32 %v1326_v4, %v1305_v5 }
 0x69a   : > { %v1365_v21 = vpop.permute.xlu1 %1364 }
 0x69b   : > { %v1692_v13 = vpack.c.bf16 %v1338_v6, %v1338_v6  ;;  %v1690_v0 = vpack.c.bf16 %v1308_v11, %v1308_v11  ;;  %v1368_v12 = vmul.f32 %v1365_v21, %v1326_v4 }
 0x69d   : > { %1319 = vst.msk [vmem:[#allocation3 + $0x4] sm:$0xf] %vm1317_vm12, %v1690_v0  ;;  %v1694_v7 = vpack.c.bf16 %v1368_v12, %v1368_v12 }
 0x69e   : > { %v1978_v61 = vpop.eup %1977  ;;  %1349 = vst.msk [vmem:[#allocation3 + $0x4] sm:$0xf] %vm1347_vm13, %v1692_v13 }
 0x69f   : > { %v1980_v55 = vpop.eup %1979  ;;  %1394 = vperm.xlu1 %1961, %v1978_v61   ;;  %1379 = vst.msk [vmem:[#allocation3 + $0x4] sm:$0xf] %vm1377_vm14, %v1694_v7 }
 0x6a0   : > { %1389 = vperm.xlu0 %1960, %v1980_v55  }
 0x71a   : > { %v1395_v24 = vpop.permute.xlu1 %1394 }
 0x71b   : > { %v1398_v25 = vmul.f32 %v1395_v24, %v1326_v4  ;;  %v1390_v44 = vpop.permute.xlu0 %1389 }
 0x71c   : > { %v1397_v30 = vmul.f32 %v1390_v44, %v1325_v38 }
 0x71d   : > { %v1696_v46 = vpack.c.bf16 %v1398_v25, %v1398_v25 }
 0x71e   : > { %v1695_v48 = vpack.c.bf16 %v1397_v30, %v1397_v30 }
 0x71f   : > { %1409 = vst.msk [vmem:[#allocation3 + $0x4] sm:$0xf] %vm1407_vm15, %v1696_v46 }
 0x720   : > { %1408 = vst.msk [vmem:[#allocation3] sm:$0xf] %vm1407_vm15, %v1695_v48 }
 0x727   : > { %v1964_v1 = vld [vmem:[#allocation3] sm:$0xff]  }
 0x728   : > { %1792 = vmatmul.mubr.msk.bf16.vlgmr.msra.gmra.mxu0 %vm393_vm1, %v1964_v1 }
 0x7e8   : > { %v1477_v50 = vpop.f32.mrf.mxu0 }
 0x7e9   : > { %v1478_v26 = vadd.f32 %v1676_v47, %v1477_v50 }
 0x7ea   : > { %v1793_v51 = vpop.f32.mrf.mxu0 }
 0x7eb   : > { %1484 = vst.msk [vmem:[%s2468_s23] sm:$0xff] %vm393_vm1, %v1478_v26 }
 0x7ec   : > { %v1480_v2 = vpop.f32.mrf.mxu0 }
 0x7ed   : > { %v1481_v35 = vadd.f32 %v1676_v47, %v1480_v2 }
 0x7ee   : > { %v1794_v36 = vpop.f32.mrf.mxu0 }
 0x7ef   : > { %1485 = vst.msk [vmem:[%s2468_s23 + $0x8] sm:$0xff] %vm393_vm1, %v1481_v35 }
 0x7f0   : > { %2100 = shalt.err (!%p2097_p10)
}
 0x7f1   : > { %s2101_s23 = scalar_lea.hbm %s2743_s21, 256  ;;  %s2105_s17 = scalar_lea.hbm %s2802_s7, 512 }
 0x7f2   : > { %p2102_p7 = scmp.ne.s32.totalorder %s2743_s21, %s2101_s23  ;;  %p2106_p9 = scmp.lt.s32.totalorder %s2743_s21, %s2802_s7 }
 0x7f3   : > { %p2107_p5 = scmp.lt.s32.totalorder %s2105_s17, %s2101_s23 }
 0x7f4   : > { %p2103_p6 = pnand %p2102_p7, %p2822_p8 }
 0x7f5   : > { %p2108_p1 = por %p2107_p5, %p2106_p9 }
 0x7f6   : > { %p2104_p12 = pneg %p2103_p6 }
 0x7f8   : > { %p2109_p4 = pnand %p2108_p1, %p2104_p12 }
 0x7fa   : > { %2112 = shalt.err (!%p2109_p4)
}
 0x7fb   : > { %s2209_s19 = smov 128   ;;  %s2210_s20 = smov 8  }
 0x7fc   : > { %1809 = dma.vmem_to_hbm [thread:$0]  (%p2822_p8), %s2745_s22, 256, %s2743_s21, %s1487_s27, %s2209_s19, %s2209_s19, %s2210_s20  }
 0x7fd PF: > { %s1517_s5 = sand.u32 1, %s2159_s24   ;;  %p2823_p13 = scmp.ne.s32.totalorder %s2812_s12, 0 }
 0x7fe   : > { %p2824_p0 = scmp.ge.s32.totalorder %s2179_s29, 2  ;;  %s1518_s30 = scalar_lea.sflag [#allocation9], %s1517_s5 }
 0x800   : > { %p1826_p3 = pnand %p2824_p0, %p2823_p13 }
 0x802   : > { %p1827_p2 = pneg %p1826_p3 }
 0x804   : > { %2154 = dma.done.wait (%p1827_p2), %s1518_s30, 256  }
 0x805   : > { %2156 = vsyncadd (%p1827_p2), %s1518_s30, 4294967040  ;;  %s25_s29 = sadd.s32 1, %s2179_s29   ;;  %s2825_s24 = smov %s2163_s25 }
 0x806   : > { %p22_p11 = scmp.ge.s32.totalorder %s25_s29, 4   ;;  %s2826_s25 = smov %s2167_s26 }
 0x807   : > { %s2827_s26 = smov %s2372_s15  ;;  %s2828_s27 = smov %s2175_s28 }
 0x808   : > { %s2829_s28 = smov %s2831_s16  ;;  %24 = sbr.rel (!%p22_p11) target bundleno = 12 (0xc), region = 134 }
 0x80d   :  { %1523 = vsyncpa [#allocation8], 1 }
 0x80e   :  { %1525 = vsyncpa [#allocation8 + $0x1], 1 }
 0x80f   :  { %1526 = vsyncpa [#allocation11], 1 }
 0x810   :  { %1527 = vsyncpa [#allocation14], 1 }
 0x811   :  { %1528 = vsyncpa [#allocation9], 1 }
 0x812   :  { %1530 = vsyncpa [#allocation9 + $0x1], 1 }

</bundles_post_ra>
